<compile_context>
chip_gen: v7x
topology: tpu7x:2x2x1
jax: 0.10.0
libtpu: 0.0.40
codegen_flags: <defaults>
</compile_context>

<pallas_src>
import jax
import jax.numpy as jnp
from jax import lax
from jax.experimental import pallas as pl
from jax.experimental.pallas import tpu as pltpu


def _ru(x, m):
    return -(-x // m) * m


def _batch_pad(B, compute_dtype):
    sub = 16 if compute_dtype == jnp.bfloat16 else 8   # bf16 min tile is (16, 128)
    return max(sub, _ru(B, sub))


def _slab_layout(A, H, T, L):
    """128-aligned static offsets for the single lane-dense f32 output slab."""
    offs = {}
    cur = 0
    offs["logits"] = cur
    cur += _ru(A, 128)
    offs["h"] = []
    for _ in range(L):
        offs["h"].append(cur)
        cur += _ru(H, 128)
    offs["c"] = []
    for _ in range(L):
        offs["c"].append(cur)
        cur += _ru(H, 128)
    offs["attn"] = cur
    cur += _ru(T, 128)
    return offs, cur


def _make_decoder_kernel(L, B, T, H, E, A, Hg, offs, compute_dtype):
    f32 = jnp.float32
    wd = compute_dtype

    def kernel(embed_ref, hid_ref, cell_ref, enc_ref, enc_len_ref,
               w_ctx_c_ref, w_ctx_h_ref, b_ctx_ref, *rest):
        n_lstm = 4 + 3 * (L - 1)
        lstm_refs = rest[:n_lstm]
        w_out_ref = rest[n_lstm]
        b_out_ref = rest[n_lstm + 1]
        slab_ref = rest[n_lstm + 2]

        enc = enc_ref[...]                                        # (B, T, H) wd

        # ---- attention: length-masked softmax(dot(h_top, enc)) over T (MXU) ----
        q = hid_ref[L - 1].astype(wd)[:, None, :]                 # (B, 1, H)
        scores = jnp.einsum('bqh,bth->bqt', q, enc,
                            preferred_element_type=f32)           # (B, 1, T)
        t_iota = lax.broadcasted_iota(jnp.int32, (B, 1, T), 2)
        mask = t_iota < enc_len_ref[...][:, :, None]               # (B, 1, T)
        masked = jnp.where(mask, scores, jnp.full_like(scores, -1e30))
        m = jnp.max(masked, axis=2, keepdims=True)
        e = jnp.exp(masked - m) * mask.astype(f32)
        denom = jnp.maximum(jnp.sum(e, axis=2, keepdims=True), 1e-20)
        attn = e / denom                                          # exact (returned value)

        # context = bmm(encoder_output^T, attn_weights)  (MXU)
        ctx = jnp.einsum('bqt,bth->bqh', attn.astype(wd), enc,
                         preferred_element_type=f32).reshape(B, H)  # (B, H) f32

        # ---- context projection: split matmuls, no lane-dim concatenation ----
        acc = jnp.dot(ctx.astype(wd), w_ctx_c_ref[...],
                      preferred_element_type=f32)
        for l in range(L):
            acc = acc + jnp.dot(hid_ref[l].astype(wd), w_ctx_h_ref[l],
                                preferred_element_type=f32)
        context = jnp.tanh(acc + b_ctx_ref[...])                  # (B, H) f32

        # ---- single-step multi-layer LSTM, fused gates (i|f|g|o, each Hg wide) ----
        embed = embed_ref[...]                                    # (B, E) wd
        ctx_wd = context.astype(wd)
        x = None
        for l in range(L):
            if l == 0:
                w_e, w_c, w_hh, b = (lstm_refs[0], lstm_refs[1],
                                     lstm_refs[2], lstm_refs[3])
                gates = (jnp.dot(embed, w_e[...], preferred_element_type=f32)
                         + jnp.dot(ctx_wd, w_c[...], preferred_element_type=f32)
                         + jnp.dot(hid_ref[0].astype(wd), w_hh[...],
                                   preferred_element_type=f32)
                         + b[...])                                # (B, 4Hg) f32
            else:
                base = 4 + 3 * (l - 1)
                w_x, w_hh, b = (lstm_refs[base], lstm_refs[base + 1],
                                lstm_refs[base + 2])
                gates = (jnp.dot(x, w_x[...], preferred_element_type=f32)
                         + jnp.dot(hid_ref[l].astype(wd), w_hh[...],
                                   preferred_element_type=f32)
                         + b[...])
            i_g = jax.nn.sigmoid(gates[:, 0 * Hg:0 * Hg + H])
            f_g = jax.nn.sigmoid(gates[:, 1 * Hg:1 * Hg + H])
            g_g = jnp.tanh(gates[:, 2 * Hg:2 * Hg + H])
            o_g = jax.nn.sigmoid(gates[:, 3 * Hg:3 * Hg + H])
            c_new = f_g * cell_ref[l] + i_g * g_g                 # f32 elementwise
            h_new = o_g * jnp.tanh(c_new)
            # Direct slice-stores into the lane-dense slab at 128-aligned offsets.
            slab_ref[:, offs["h"][l]:offs["h"][l] + H] = h_new
            slab_ref[:, offs["c"][l]:offs["c"][l] + H] = c_new
            x = h_new.astype(wd)
        # TODO(synk): nn.LSTM inter-layer dropout is train-time only; omitted (eval).

        # ---- output projection (softmax done in the wrapper from logits) ----
        logits = (jnp.dot(x, w_out_ref[...], preferred_element_type=f32)
                  + b_out_ref[...])
        slab_ref[:, offs["logits"]:offs["logits"] + A] = logits
        slab_ref[:, offs["attn"]:offs["attn"] + T] = attn.reshape(B, T)

    return kernel


def init_params(key, H, E, L, A):
    ks = jax.random.split(key, 8 + L)
    s = 0.1
    params = {
        "embedding": jax.random.normal(ks[0], (A, E), jnp.float32) * s,
        "ctx_w": jax.random.normal(ks[1], (H, H * (L + 1)), jnp.float32) * s,
        "ctx_b": jax.random.normal(ks[2], (H,), jnp.float32) * s,
        "out_w": jax.random.normal(ks[3], (A, H), jnp.float32) * s,
        "out_b": jax.random.normal(ks[4], (A,), jnp.float32) * s,
        "lstm": [],
    }
    for l in range(L):
        in_dim = E + H if l == 0 else H
        k = jax.random.split(ks[5 + l], 4)
        params["lstm"].append(dict(
            w_ih=jax.random.normal(k[0], (4 * H, in_dim), jnp.float32) * s,
            w_hh=jax.random.normal(k[1], (4 * H, H), jnp.float32) * s,
            b_ih=jax.random.normal(k[2], (4 * H,), jnp.float32) * s,
            b_hh=jax.random.normal(k[3], (4 * H,), jnp.float32) * s,
        ))
    return params


def _pack_gate_cols(w_t, H, Hg, dtype):
    """(in_dim, 4H) cols [i|f|g|o] -> (in_dim, 4Hg), each gate 128-lane aligned."""
    in_dim = w_t.shape[0]
    w4 = w_t.reshape(in_dim, 4, H)
    if Hg != H:
        w4 = jnp.pad(w4, ((0, 0), (0, 0), (0, Hg - H)))
    return w4.reshape(in_dim, 4 * Hg).astype(dtype)


def _pack_gate_bias(b, H, Hg):
    b4 = b.reshape(4, H)
    if Hg != H:
        b4 = jnp.pad(b4, ((0, 0), (0, Hg - H)))
    return b4.reshape(1, 4 * Hg).astype(jnp.float32)


def pack_params(params, *, H, E, L, A, compute_dtype=jnp.float32):
    """One-time weight pre-pack (call ONCE, before the autoregressive decode loop)."""
    f32 = jnp.float32
    wd = compute_dtype
    Hg = _ru(H, 128)
    W = params["ctx_w"]                                        # (H, H*(L+1))
    # PyTorch flattens hidden.permute(1,2,0) with column index h*L + l; pre-split into
    # a context block plus one (H, H) block per layer so the kernel never concatenates.
    w_ctx_c = W[:, :H].T.astype(wd)                            # (H, H)
    w_ctx_h = jnp.transpose(W[:, H:].reshape(H, H, L), (2, 1, 0)).astype(wd)  # (L,H,H)
    packed = {
        "embedding": params["embedding"].astype(wd),           # (A, E)
        "w_ctx_c": w_ctx_c,
        "w_ctx_h": w_ctx_h,
        "b_ctx": params["ctx_b"].reshape(1, H).astype(f32),
        "w_out": params["out_w"].T.astype(wd),                 # (H, A)
        "b_out": params["out_b"].reshape(1, A).astype(f32),
        "lstm": [],
        "Hg": Hg,
    }
    # TODO(synk): add int8 (v5e/v6e) / fp8 (v7x) weight-only quantization with
    # per-channel scales dequantized in-kernel; bf16 supported via compute_dtype.
    for l in range(L):
        ll = params["lstm"][l]
        w_ih_t = ll["w_ih"].T                                  # (in_dim, 4H), i|f|g|o
        b = _pack_gate_bias(ll["b_ih"] + ll["b_hh"], H, Hg)
        if l == 0:
            packed["lstm"].append(dict(
                w_ih_e=_pack_gate_cols(w_ih_t[:E], H, Hg, wd),  # (E, 4Hg) embed part
                w_ih_c=_pack_gate_cols(w_ih_t[E:], H, Hg, wd),  # (H, 4Hg) context part
                w_hh=_pack_gate_cols(ll["w_hh"].T, H, Hg, wd),  # (H, 4Hg)
                b=b))
        else:
            packed["lstm"].append(dict(
                w_ih=_pack_gate_cols(w_ih_t, H, Hg, wd),        # (H, 4Hg)
                w_hh=_pack_gate_cols(ll["w_hh"].T, H, Hg, wd),
                b=b))
    return packed


def prepare_encoder(encoder_output, enc_len, *, compute_dtype=jnp.float32):
    """One-time per-utterance encoder relayout + batch pad (NOT per decode step)."""
    T, B, H = encoder_output.shape
    B_pad = _batch_pad(B, compute_dtype)
    enc_bth = jnp.transpose(encoder_output, (1, 0, 2)).astype(compute_dtype)
    enc_len2 = enc_len.reshape(B, 1).astype(jnp.int32)
    if B_pad != B:
        pb = B_pad - B
        enc_bth = jnp.pad(enc_bth, ((0, pb), (0, 0), (0, 0)))
        enc_len2 = jnp.pad(enc_len2, ((0, pb), (0, 0)), constant_values=1)
    return {"enc": enc_bth, "enc_len": enc_len2, "B": B, "B_pad": B_pad, "T": T}


def decoder_forward(packed, enc_prep, probs, hidden_state, cell_state,
                    prev_attention, *, H, E, L, A, compute_dtype=jnp.float32):
    f32 = jnp.float32
    wd = compute_dtype
    B = probs.shape[0]
    B_pad = enc_prep["B_pad"]
    T = enc_prep["T"]
    Hg = packed["Hg"]
    offs, out_pad = _slab_layout(A, H, T, L)

    # Per-step glue (plain JAX, cheap): argmax + embedding gather, batch pad of state.
    char = jnp.argmax(probs, axis=-1)                           # first-max, like torch.max
    embed_char = jnp.take(packed["embedding"], char, axis=0)    # (B, E) wd
    hid = hidden_state.astype(f32)
    cell = cell_state.astype(f32)
    if B_pad != B:
        pb = B_pad - B
        embed_char = jnp.pad(embed_char, ((0, pb), (0, 0)))
        hid = jnp.pad(hid, ((0, 0), (0, pb), (0, 0)))
        cell = jnp.pad(cell, ((0, 0), (0, pb), (0, 0)))

    operands = [embed_char, hid, cell, enc_prep["enc"], enc_prep["enc_len"],
                packed["w_ctx_c"], packed["w_ctx_h"], packed["b_ctx"]]
    l0 = packed["lstm"][0]
    operands += [l0["w_ih_e"], l0["w_ih_c"], l0["w_hh"], l0["b"]]
    for l in range(1, L):
        ll = packed["lstm"][l]
        operands += [ll["w_ih"], ll["w_hh"], ll["b"]]
    operands += [packed["w_out"], packed["b_out"]]

    # VMEM request from the actual footprint (headroom, capped for v7x's 64 MiB).
    out_bytes = B_pad * out_pad * 4
    op_bytes = sum(int(x.size) * x.dtype.itemsize for x in operands)
    vmem_limit = int(min(max(2 * (op_bytes + out_bytes) + (2 << 20), 8 << 20), 48 << 20))

    flops = 2 * B_pad * (2 * T * H + (L + 1) * H * H
                         + (E + 2 * H) * 4 * Hg + (L - 1) * 2 * H * 4 * Hg
                         + H * A)
    transcendentals = B_pad * (T + H + L * 5 * H)
    cost = pl.CostEstimate(flops=flops, transcendentals=transcendentals,
                           bytes_accessed=op_bytes + out_bytes)

    kernel = _make_decoder_kernel(L, B_pad, T, H, E, A, Hg, offs, wd)
    vmem = pltpu.MemorySpace.VMEM
    slab = pl.pallas_call(
        kernel,
        out_shape=jax.ShapeDtypeStruct((B_pad, out_pad), f32),
        in_specs=[pl.BlockSpec(memory_space=vmem) for _ in operands],
        out_specs=pl.BlockSpec(memory_space=vmem),
        compiler_params=pltpu.CompilerParams(vmem_limit_bytes=vmem_limit),
        cost_estimate=cost,
    )(*operands)

    logits = slab[:B, offs["logits"]:offs["logits"] + A]
    new_h = jnp.stack([slab[:B, o:o + H] for o in offs["h"]])
    new_c = jnp.stack([slab[:B, o:o + H] for o in offs["c"]])
    attn = slab[:B, offs["attn"]:offs["attn"] + T]
    oprobs = jax.nn.softmax(logits, axis=-1)      # exact softmax outside the kernel
    return logits, oprobs, new_h, new_c, attn


def decoder_ref(params, probs, hid, cell, enc, enc_len, prev_attn, *, H, E, L, A):
    """Pure-JAX reference mirroring the PyTorch forward."""
    B = probs.shape[0]
    T = enc.shape[0]
    hi = jax.lax.Precision.HIGHEST
    hid_top = hid[-1]
    scores = jnp.einsum('tbh,bh->bt', enc, hid_top, precision=hi)
    mask = jnp.arange(T)[None, :] < enc_len.reshape(B, 1)
    masked = jnp.where(mask, scores, -1e30)
    m = jnp.max(masked, axis=1, keepdims=True)
    e = jnp.exp(masked - m) * mask.astype(jnp.float32)
    attn = e / jnp.sum(e, axis=1, keepdims=True)
    context = jnp.einsum('bt,tbh->bh', attn, enc, precision=hi)
    tmp = jnp.concatenate(
        [context, jnp.transpose(hid, (1, 2, 0)).reshape(B, H * L)], axis=1)
    ctx2 = jnp.tanh(jnp.dot(tmp, params["ctx_w"].T, precision=hi) + params["ctx_b"])
    idx = jnp.argmax(probs, axis=-1)
    embed = params["embedding"][idx]
    x = jnp.concatenate([embed, ctx2], axis=1)
    new_h, new_c = [], []
    for l in range(L):
        ll = params["lstm"][l]
        gates = (jnp.dot(x, ll["w_ih"].T, precision=hi) + ll["b_ih"]
                 + jnp.dot(hid[l], ll["w_hh"].T, precision=hi) + ll["b_hh"])
        i_g, f_g, g_g, o_g = (gates[:, :H], gates[:, H:2*H],
                              gates[:, 2*H:3*H], gates[:, 3*H:])
        c_new = jax.nn.sigmoid(f_g) * cell[l] + jax.nn.sigmoid(i_g) * jnp.tanh(g_g)
        h_new = jax.nn.sigmoid(o_g) * jnp.tanh(c_new)
        new_h.append(h_new); new_c.append(c_new)
        x = h_new
    logits = jnp.dot(x, params["out_w"].T, precision=hi) + params["out_b"]
    return (logits, jax.nn.softmax(logits, axis=-1),
            jnp.stack(new_h), jnp.stack(new_c), attn)


if __name__ == "__main__":
    H, E, L, A, T, B = 32, 16, 2, 16, 8, 2

    key = jax.random.PRNGKey(0)
    kp, k1, k2, k3, k4, k5 = jax.random.split(key, 6)
    params = init_params(kp, H, E, L, A)

    probs = jax.nn.softmax(jax.random.normal(k1, (B, A), jnp.float32), axis=-1)
    hidden_state = jax.random.normal(k2, (L, B, H), jnp.float32) * 0.1
    cell_state = jax.random.normal(k3, (L, B, H), jnp.float32) * 0.1
    encoder_output = jax.random.normal(k4, (T, B, H), jnp.float32) * 0.1
    enc_len = jnp.array([T, T - 3], dtype=jnp.int32)
    prev_attention = jax.nn.softmax(jax.random.normal(k5, (B, T), jnp.float32), axis=-1)

    ref = decoder_ref(params, probs, hidden_state, cell_state, encoder_output,
                      enc_len, prev_attention, H=H, E=E, L=L, A=A)
    names = ["output", "probs", "latest_hidden", "latest_cell", "attn_weights"]

    # f32 path (tight tolerance) and bf16-weight path (looser tolerance).
    for wd, tol in ((jnp.float32, 5e-3), (jnp.bfloat16, 5e-2)):
        packed = pack_params(params, H=H, E=E, L=L, A=A, compute_dtype=wd)
        enc_prep = prepare_encoder(encoder_output, enc_len, compute_dtype=wd)
        out = decoder_forward(packed, enc_prep, probs, hidden_state, cell_state,
                              prev_attention, H=H, E=E, L=L, A=A, compute_dtype=wd)
        out = jax.block_until_ready(out)
        for n, a, b in zip(names, out, ref):
            assert a.shape == b.shape, (n, a.shape, b.shape)
            err = float(jnp.max(jnp.abs(a - b)))
            assert jnp.allclose(a, b, atol=tol, rtol=tol), (n, str(wd), err)

    print("KERNEL_OK")
</pallas_src>

<mosaic_0001>
module attributes {stable_mosaic.version = 11 : i64} {
  func.func @kernel(%arg0: memref<8x16xf32, #tpu.memory_space<vmem>>, %arg1: memref<2x8x32xf32, #tpu.memory_space<vmem>>, %arg2: memref<2x8x32xf32, #tpu.memory_space<vmem>>, %arg3: memref<8x8x32xf32, #tpu.memory_space<vmem>>, %arg4: memref<8x1xi32, #tpu.memory_space<vmem>>, %arg5: memref<32x32xf32, #tpu.memory_space<vmem>>, %arg6: memref<2x32x32xf32, #tpu.memory_space<vmem>>, %arg7: memref<1x32xf32, #tpu.memory_space<vmem>>, %arg8: memref<16x512xf32, #tpu.memory_space<vmem>>, %arg9: memref<32x512xf32, #tpu.memory_space<vmem>>, %arg10: memref<32x512xf32, #tpu.memory_space<vmem>>, %arg11: memref<1x512xf32, #tpu.memory_space<vmem>>, %arg12: memref<32x512xf32, #tpu.memory_space<vmem>>, %arg13: memref<32x512xf32, #tpu.memory_space<vmem>>, %arg14: memref<1x512xf32, #tpu.memory_space<vmem>>, %arg15: memref<32x16xf32, #tpu.memory_space<vmem>>, %arg16: memref<1x16xf32, #tpu.memory_space<vmem>>, %arg17: memref<8x768xf32, #tpu.memory_space<vmem>>) attributes {dimension_semantics = [], scalar_prefetch = 0 : i64, scratch_operands = 0 : i64, tpu.core_type = #tpu.core_type<tc>} {
    %c0 = arith.constant 0 : index
    %c0_0 = arith.constant 0 : index
    %c0_1 = arith.constant 0 : index
    %0 = vector.load %arg3[%c0, %c0_0, %c0_1] : memref<8x8x32xf32, #tpu.memory_space<vmem>>, vector<8x8x32xf32>
    %c1 = arith.constant 1 : index
    %c0_2 = arith.constant 0 : index
    %c0_3 = arith.constant 0 : index
    %1 = vector.load %arg1[%c1, %c0_2, %c0_3] : memref<2x8x32xf32, #tpu.memory_space<vmem>>, vector<1x8x32xf32>
    %2 = vector.shape_cast %1 : vector<1x8x32xf32> to vector<8x32xf32>
    %3 = vector.shape_cast %2 : vector<8x32xf32> to vector<8x1x32xf32>
    "tpu.trace_start"() <{level = 10 : i32, message = "bqh,bth->bqt"}> : () -> ()
    %cst = arith.constant dense<0.000000e+00> : vector<8x1x8xf32>
    %4 = tpu.matmul %3, %0, %cst {dimension_numbers = #tpu.dot_dimension_numbers<[2], [2], [1], [1], [0, 0, 0, 1, 1, 1], [0], [0]>} : vector<8x1x32xf32>, vector<8x8x32xf32>, vector<8x1x8xf32> -> vector<8x1x8xf32>
    "tpu.trace_stop"() : () -> ()
    %5 = tpu.iota {dimensions = array<i32: 2>} : vector<8x1x8xi32>
    %c0_4 = arith.constant 0 : index
    %c0_5 = arith.constant 0 : index
    %6 = vector.load %arg4[%c0_4, %c0_5] : memref<8x1xi32, #tpu.memory_space<vmem>>, vector<8x1xi32>
    %7 = vector.shape_cast %6 : vector<8x1xi32> to vector<8x1x1xi32>
    %8 = vector.broadcast %7 : vector<8x1x1xi32> to vector<8x1x8xi32>
    %9 = arith.cmpi slt, %5, %8 : vector<8x1x8xi32>
    %cst_6 = arith.constant -1.000000e+30 : f32
    %10 = vector.broadcast %cst_6 : f32 to vector<8x1x8xf32>
    %11 = arith.select %9, %4, %10 : vector<8x1x8xi1>, vector<8x1x8xf32>
    %cst_7 = arith.constant dense<0xFF800000> : vector<8x1xf32>
    %12 = vector.multi_reduction <maximumf>, %11, %cst_7 [2] : vector<8x1x8xf32> to vector<8x1xf32>
    %13 = vector.shape_cast %12 : vector<8x1xf32> to vector<8x1x1xf32>
    %14 = vector.broadcast %13 : vector<8x1x1xf32> to vector<8x1x8xf32>
    %15 = arith.subf %11, %14 : vector<8x1x8xf32>
    %16 = math.exp %15 : vector<8x1x8xf32>
    %17 = arith.extui %9 : vector<8x1x8xi1> to vector<8x1x8xi32>
    %18 = arith.sitofp %17 : vector<8x1x8xi32> to vector<8x1x8xf32>
    %19 = arith.mulf %16, %18 : vector<8x1x8xf32>
    %cst_8 = arith.constant dense<0.000000e+00> : vector<8x1xf32>
    %20 = vector.multi_reduction <add>, %19, %cst_8 [2] : vector<8x1x8xf32> to vector<8x1xf32>
    %21 = vector.shape_cast %20 : vector<8x1xf32> to vector<8x1x1xf32>
    %cst_9 = arith.constant 9.99999968E-21 : f32
    %22 = vector.broadcast %cst_9 : f32 to vector<8x1x1xf32>
    %23 = arith.maximumf %21, %22 : vector<8x1x1xf32>
    %24 = vector.broadcast %23 : vector<8x1x1xf32> to vector<8x1x8xf32>
    %25 = arith.divf %19, %24 : vector<8x1x8xf32>
    "tpu.trace_start"() <{level = 10 : i32, message = "bqt,bth->bqh"}> : () -> ()
    %cst_10 = arith.constant dense<0.000000e+00> : vector<8x1x32xf32>
    %26 = tpu.matmul %25, %0, %cst_10 {dimension_numbers = #tpu.dot_dimension_numbers<[2], [1], [1], [2], [0, 0, 0, 1, 1, 2], [0], [0]>} : vector<8x1x8xf32>, vector<8x8x32xf32>, vector<8x1x32xf32> -> vector<8x1x32xf32>
    "tpu.trace_stop"() : () -> ()
    %27 = vector.shape_cast %26 : vector<8x1x32xf32> to vector<8x32xf32>
    %c0_11 = arith.constant 0 : index
    %c0_12 = arith.constant 0 : index
    %28 = vector.load %arg5[%c0_11, %c0_12] : memref<32x32xf32, #tpu.memory_space<vmem>>, vector<32x32xf32>
    %cst_13 = arith.constant dense<0.000000e+00> : vector<8x32xf32>
    %29 = tpu.matmul %27, %28, %cst_13 {dimension_numbers = #tpu.dot_dimension_numbers<[1], [0], [0], [1], [0, 0, 1, 1], [], []>} : vector<8x32xf32>, vector<32x32xf32>, vector<8x32xf32> -> vector<8x32xf32>
    %c0_14 = arith.constant 0 : index
    %c0_15 = arith.constant 0 : index
    %c0_16 = arith.constant 0 : index
    %30 = vector.load %arg1[%c0_14, %c0_15, %c0_16] : memref<2x8x32xf32, #tpu.memory_space<vmem>>, vector<1x8x32xf32>
    %31 = vector.shape_cast %30 : vector<1x8x32xf32> to vector<8x32xf32>
    %c0_17 = arith.constant 0 : index
    %c0_18 = arith.constant 0 : index
    %c0_19 = arith.constant 0 : index
    %32 = vector.load %arg6[%c0_17, %c0_18, %c0_19] : memref<2x32x32xf32, #tpu.memory_space<vmem>>, vector<1x32x32xf32>
    %33 = vector.shape_cast %32 : vector<1x32x32xf32> to vector<32x32xf32>
    %cst_20 = arith.constant dense<0.000000e+00> : vector<8x32xf32>
    %34 = tpu.matmul %31, %33, %cst_20 {dimension_numbers = #tpu.dot_dimension_numbers<[1], [0], [0], [1], [0, 0, 1, 1], [], []>} : vector<8x32xf32>, vector<32x32xf32>, vector<8x32xf32> -> vector<8x32xf32>
    %35 = arith.addf %29, %34 : vector<8x32xf32>
    %c1_21 = arith.constant 1 : index
    %c0_22 = arith.constant 0 : index
    %c0_23 = arith.constant 0 : index
    %36 = vector.load %arg1[%c1_21, %c0_22, %c0_23] : memref<2x8x32xf32, #tpu.memory_space<vmem>>, vector<1x8x32xf32>
    %37 = vector.shape_cast %36 : vector<1x8x32xf32> to vector<8x32xf32>
    %c1_24 = arith.constant 1 : index
    %c0_25 = arith.constant 0 : index
    %c0_26 = arith.constant 0 : index
    %38 = vector.load %arg6[%c1_24, %c0_25, %c0_26] : memref<2x32x32xf32, #tpu.memory_space<vmem>>, vector<1x32x32xf32>
    %39 = vector.shape_cast %38 : vector<1x32x32xf32> to vector<32x32xf32>
    %cst_27 = arith.constant dense<0.000000e+00> : vector<8x32xf32>
    %40 = tpu.matmul %37, %39, %cst_27 {dimension_numbers = #tpu.dot_dimension_numbers<[1], [0], [0], [1], [0, 0, 1, 1], [], []>} : vector<8x32xf32>, vector<32x32xf32>, vector<8x32xf32> -> vector<8x32xf32>
    %41 = arith.addf %35, %40 : vector<8x32xf32>
    %c0_28 = arith.constant 0 : index
    %c0_29 = arith.constant 0 : index
    %42 = vector.load %arg7[%c0_28, %c0_29] : memref<1x32xf32, #tpu.memory_space<vmem>>, vector<1x32xf32>
    %43 = vector.broadcast %42 : vector<1x32xf32> to vector<8x32xf32>
    %44 = arith.addf %41, %43 : vector<8x32xf32>
    %45 = math.tanh %44 : vector<8x32xf32>
    %c0_30 = arith.constant 0 : index
    %c0_31 = arith.constant 0 : index
    %46 = vector.load %arg0[%c0_30, %c0_31] : memref<8x16xf32, #tpu.memory_space<vmem>>, vector<8x16xf32>
    %c0_32 = arith.constant 0 : index
    %c0_33 = arith.constant 0 : index
    %47 = vector.load %arg8[%c0_32, %c0_33] : memref<16x512xf32, #tpu.memory_space<vmem>>, vector<16x512xf32>
    %cst_34 = arith.constant dense<0.000000e+00> : vector<8x512xf32>
    %48 = tpu.matmul %46, %47, %cst_34 {dimension_numbers = #tpu.dot_dimension_numbers<[1], [0], [0], [1], [0, 0, 1, 1], [], []>} : vector<8x16xf32>, vector<16x512xf32>, vector<8x512xf32> -> vector<8x512xf32>
    %c0_35 = arith.constant 0 : index
    %c0_36 = arith.constant 0 : index
    %49 = vector.load %arg9[%c0_35, %c0_36] : memref<32x512xf32, #tpu.memory_space<vmem>>, vector<32x512xf32>
    %cst_37 = arith.constant dense<0.000000e+00> : vector<8x512xf32>
    %50 = tpu.matmul %45, %49, %cst_37 {dimension_numbers = #tpu.dot_dimension_numbers<[1], [0], [0], [1], [0, 0, 1, 1], [], []>} : vector<8x32xf32>, vector<32x512xf32>, vector<8x512xf32> -> vector<8x512xf32>
    %51 = arith.addf %48, %50 : vector<8x512xf32>
    %c0_38 = arith.constant 0 : index
    %c0_39 = arith.constant 0 : index
    %c0_40 = arith.constant 0 : index
    %52 = vector.load %arg1[%c0_38, %c0_39, %c0_40] : memref<2x8x32xf32, #tpu.memory_space<vmem>>, vector<1x8x32xf32>
    %53 = vector.shape_cast %52 : vector<1x8x32xf32> to vector<8x32xf32>
    %c0_41 = arith.constant 0 : index
    %c0_42 = arith.constant 0 : index
    %54 = vector.load %arg10[%c0_41, %c0_42] : memref<32x512xf32, #tpu.memory_space<vmem>>, vector<32x512xf32>
    %cst_43 = arith.constant dense<0.000000e+00> : vector<8x512xf32>
    %55 = tpu.matmul %53, %54, %cst_43 {dimension_numbers = #tpu.dot_dimension_numbers<[1], [0], [0], [1], [0, 0, 1, 1], [], []>} : vector<8x32xf32>, vector<32x512xf32>, vector<8x512xf32> -> vector<8x512xf32>
    %56 = arith.addf %51, %55 : vector<8x512xf32>
    %c0_44 = arith.constant 0 : index
    %c0_45 = arith.constant 0 : index
    %57 = vector.load %arg11[%c0_44, %c0_45] : memref<1x512xf32, #tpu.memory_space<vmem>>, vector<1x512xf32>
    %58 = vector.broadcast %57 : vector<1x512xf32> to vector<8x512xf32>
    %59 = arith.addf %56, %58 : vector<8x512xf32>
    %60 = vector.extract_strided_slice %59 {offsets = [0, 0], sizes = [8, 32], strides = [1, 1]} : vector<8x512xf32> to vector<8x32xf32>
    %61 = arith.negf %60 : vector<8x32xf32>
    %62 = math.exp %61 : vector<8x32xf32>
    %cst_46 = arith.constant 1.000000e+00 : f32
    %63 = vector.broadcast %cst_46 : f32 to vector<8x32xf32>
    %64 = arith.addf %63, %62 : vector<8x32xf32>
    %65 = arith.divf %63, %64 : vector<8x32xf32>
    %66 = vector.extract_strided_slice %59 {offsets = [0, 128], sizes = [8, 32], strides = [1, 1]} : vector<8x512xf32> to vector<8x32xf32>
    %67 = arith.negf %66 : vector<8x32xf32>
    %68 = math.exp %67 : vector<8x32xf32>
    %cst_47 = arith.constant 1.000000e+00 : f32
    %69 = vector.broadcast %cst_47 : f32 to vector<8x32xf32>
    %70 = arith.addf %69, %68 : vector<8x32xf32>
    %71 = arith.divf %69, %70 : vector<8x32xf32>
    %72 = vector.extract_strided_slice %59 {offsets = [0, 256], sizes = [8, 32], strides = [1, 1]} : vector<8x512xf32> to vector<8x32xf32>
    %73 = math.tanh %72 : vector<8x32xf32>
    %74 = vector.extract_strided_slice %59 {offsets = [0, 384], sizes = [8, 32], strides = [1, 1]} : vector<8x512xf32> to vector<8x32xf32>
    %75 = arith.negf %74 : vector<8x32xf32>
    %76 = math.exp %75 : vector<8x32xf32>
    %cst_48 = arith.constant 1.000000e+00 : f32
    %77 = vector.broadcast %cst_48 : f32 to vector<8x32xf32>
    %78 = arith.addf %77, %76 : vector<8x32xf32>
    %79 = arith.divf %77, %78 : vector<8x32xf32>
    %c0_49 = arith.constant 0 : index
    %c0_50 = arith.constant 0 : index
    %c0_51 = arith.constant 0 : index
    %80 = vector.load %arg2[%c0_49, %c0_50, %c0_51] : memref<2x8x32xf32, #tpu.memory_space<vmem>>, vector<1x8x32xf32>
    %81 = vector.shape_cast %80 : vector<1x8x32xf32> to vector<8x32xf32>
    %82 = arith.mulf %71, %81 : vector<8x32xf32>
    %83 = arith.mulf %65, %73 : vector<8x32xf32>
    %84 = arith.addf %82, %83 : vector<8x32xf32>
    %85 = math.tanh %84 : vector<8x32xf32>
    %86 = arith.mulf %79, %85 : vector<8x32xf32>
    %c0_52 = arith.constant 0 : index
    %c128 = arith.constant 128 : index
    %87 = vector.load %arg17[%c0_52, %c128] : memref<8x768xf32, #tpu.memory_space<vmem>>, vector<8x32xf32>
    tpu.vector_store %arg17[%c0_52, %c128], %86 {strides = array<i32>} : memref<8x768xf32, #tpu.memory_space<vmem>>, vector<8x32xf32>,
    %c0_53 = arith.constant 0 : index
    %c384 = arith.constant 384 : index
    %88 = vector.load %arg17[%c0_53, %c384] : memref<8x768xf32, #tpu.memory_space<vmem>>, vector<8x32xf32>
    tpu.vector_store %arg17[%c0_53, %c384], %84 {strides = array<i32>} : memref<8x768xf32, #tpu.memory_space<vmem>>, vector<8x32xf32>,
    %c0_54 = arith.constant 0 : index
    %c0_55 = arith.constant 0 : index
    %89 = vector.load %arg12[%c0_54, %c0_55] : memref<32x512xf32, #tpu.memory_space<vmem>>, vector<32x512xf32>
    %cst_56 = arith.constant dense<0.000000e+00> : vector<8x512xf32>
    %90 = tpu.matmul %86, %89, %cst_56 {dimension_numbers = #tpu.dot_dimension_numbers<[1], [0], [0], [1], [0, 0, 1, 1], [], []>} : vector<8x32xf32>, vector<32x512xf32>, vector<8x512xf32> -> vector<8x512xf32>
    %c1_57 = arith.constant 1 : index
    %c0_58 = arith.constant 0 : index
    %c0_59 = arith.constant 0 : index
    %91 = vector.load %arg1[%c1_57, %c0_58, %c0_59] : memref<2x8x32xf32, #tpu.memory_space<vmem>>, vector<1x8x32xf32>
    %92 = vector.shape_cast %91 : vector<1x8x32xf32> to vector<8x32xf32>
    %c0_60 = arith.constant 0 : index
    %c0_61 = arith.constant 0 : index
    %93 = vector.load %arg13[%c0_60, %c0_61] : memref<32x512xf32, #tpu.memory_space<vmem>>, vector<32x512xf32>
    %cst_62 = arith.constant dense<0.000000e+00> : vector<8x512xf32>
    %94 = tpu.matmul %92, %93, %cst_62 {dimension_numbers = #tpu.dot_dimension_numbers<[1], [0], [0], [1], [0, 0, 1, 1], [], []>} : vector<8x32xf32>, vector<32x512xf32>, vector<8x512xf32> -> vector<8x512xf32>
    %95 = arith.addf %90, %94 : vector<8x512xf32>
    %c0_63 = arith.constant 0 : index
    %c0_64 = arith.constant 0 : index
    %96 = vector.load %arg14[%c0_63, %c0_64] : memref<1x512xf32, #tpu.memory_space<vmem>>, vector<1x512xf32>
    %97 = vector.broadcast %96 : vector<1x512xf32> to vector<8x512xf32>
    %98 = arith.addf %95, %97 : vector<8x512xf32>
    %99 = vector.extract_strided_slice %98 {offsets = [0, 0], sizes = [8, 32], strides = [1, 1]} : vector<8x512xf32> to vector<8x32xf32>
    %100 = arith.negf %99 : vector<8x32xf32>
    %101 = math.exp %100 : vector<8x32xf32>
    %cst_65 = arith.constant 1.000000e+00 : f32
    %102 = vector.broadcast %cst_65 : f32 to vector<8x32xf32>
    %103 = arith.addf %102, %101 : vector<8x32xf32>
    %104 = arith.divf %102, %103 : vector<8x32xf32>
    %105 = vector.extract_strided_slice %98 {offsets = [0, 128], sizes = [8, 32], strides = [1, 1]} : vector<8x512xf32> to vector<8x32xf32>
    %106 = arith.negf %105 : vector<8x32xf32>
    %107 = math.exp %106 : vector<8x32xf32>
    %cst_66 = arith.constant 1.000000e+00 : f32
    %108 = vector.broadcast %cst_66 : f32 to vector<8x32xf32>
    %109 = arith.addf %108, %107 : vector<8x32xf32>
    %110 = arith.divf %108, %109 : vector<8x32xf32>
    %111 = vector.extract_strided_slice %98 {offsets = [0, 256], sizes = [8, 32], strides = [1, 1]} : vector<8x512xf32> to vector<8x32xf32>
    %112 = math.tanh %111 : vector<8x32xf32>
    %113 = vector.extract_strided_slice %98 {offsets = [0, 384], sizes = [8, 32], strides = [1, 1]} : vector<8x512xf32> to vector<8x32xf32>
    %114 = arith.negf %113 : vector<8x32xf32>
    %115 = math.exp %114 : vector<8x32xf32>
    %cst_67 = arith.constant 1.000000e+00 : f32
    %116 = vector.broadcast %cst_67 : f32 to vector<8x32xf32>
    %117 = arith.addf %116, %115 : vector<8x32xf32>
    %118 = arith.divf %116, %117 : vector<8x32xf32>
    %c1_68 = arith.constant 1 : index
    %c0_69 = arith.constant 0 : index
    %c0_70 = arith.constant 0 : index
    %119 = vector.load %arg2[%c1_68, %c0_69, %c0_70] : memref<2x8x32xf32, #tpu.memory_space<vmem>>, vector<1x8x32xf32>
    %120 = vector.shape_cast %119 : vector<1x8x32xf32> to vector<8x32xf32>
    %121 = arith.mulf %110, %120 : vector<8x32xf32>
    %122 = arith.mulf %104, %112 : vector<8x32xf32>
    %123 = arith.addf %121, %122 : vector<8x32xf32>
    %124 = math.tanh %123 : vector<8x32xf32>
    %125 = arith.mulf %118, %124 : vector<8x32xf32>
    %c0_71 = arith.constant 0 : index
    %c256 = arith.constant 256 : index
    %126 = vector.load %arg17[%c0_71, %c256] : memref<8x768xf32, #tpu.memory_space<vmem>>, vector<8x32xf32>
    tpu.vector_store %arg17[%c0_71, %c256], %125 {strides = array<i32>} : memref<8x768xf32, #tpu.memory_space<vmem>>, vector<8x32xf32>,
    %c0_72 = arith.constant 0 : index
    %c512 = arith.constant 512 : index
    %127 = vector.load %arg17[%c0_72, %c512] : memref<8x768xf32, #tpu.memory_space<vmem>>, vector<8x32xf32>
    tpu.vector_store %arg17[%c0_72, %c512], %123 {strides = array<i32>} : memref<8x768xf32, #tpu.memory_space<vmem>>, vector<8x32xf32>,
    %c0_73 = arith.constant 0 : index
    %c0_74 = arith.constant 0 : index
    %128 = vector.load %arg15[%c0_73, %c0_74] : memref<32x16xf32, #tpu.memory_space<vmem>>, vector<32x16xf32>
    %cst_75 = arith.constant dense<0.000000e+00> : vector<8x16xf32>
    %129 = tpu.matmul %125, %128, %cst_75 {dimension_numbers = #tpu.dot_dimension_numbers<[1], [0], [0], [1], [0, 0, 1, 1], [], []>} : vector<8x32xf32>, vector<32x16xf32>, vector<8x16xf32> -> vector<8x16xf32>
    %c0_76 = arith.constant 0 : index
    %c0_77 = arith.constant 0 : index
    %130 = vector.load %arg16[%c0_76, %c0_77] : memref<1x16xf32, #tpu.memory_space<vmem>>, vector<1x16xf32>
    %131 = vector.broadcast %130 : vector<1x16xf32> to vector<8x16xf32>
    %132 = arith.addf %129, %131 : vector<8x16xf32>
    %c0_78 = arith.constant 0 : index
    %c0_79 = arith.constant 0 : index
    %133 = vector.load %arg17[%c0_78, %c0_79] : memref<8x768xf32, #tpu.memory_space<vmem>>, vector<8x16xf32>
    tpu.vector_store %arg17[%c0_78, %c0_79], %132 {strides = array<i32>} : memref<8x768xf32, #tpu.memory_space<vmem>>, vector<8x16xf32>,
    %134 = vector.shape_cast %25 : vector<8x1x8xf32> to vector<8x8xf32>
    %c0_80 = arith.constant 0 : index
    %c640 = arith.constant 640 : index
    %135 = vector.load %arg17[%c0_80, %c640] : memref<8x768xf32, #tpu.memory_space<vmem>>, vector<8x8xf32>
    tpu.vector_store %arg17[%c0_80, %c640], %134 {strides = array<i32>} : memref<8x768xf32, #tpu.memory_space<vmem>>, vector<8x8xf32>,
    return
  }
}

</mosaic_0001>

<bundles_post_ra>
// kernel: tpu_custom_call.1
= control target key start
LH: loop header
LB: loop body
LE: loop exit
PB: predicated region body
PF: predicated region fallthrough
CT: control target
= control target key end

     0   :  { %s4317_s0 = inlined_call_operand.hbm [shape: f32[8,16], index: 0, kind: input, shape index: {}]   ;;  %s4318_s1 = inlined_call_operand.hbm [shape: f32[2,8,32], index: 1, kind: input, shape index: {}]   ;;  %s4319_s2 = inlined_call_operand.hbm [shape: f32[2,8,32], index: 2, kind: input, shape index: {}]   ;;  %s4320_s3 = inlined_call_operand.vmem [shape: f32[8,8,32], index: 3, kind: input, shape index: {}]   ;;  %s4321_s4 = inlined_call_operand.vmem [shape: s32[8,1], index: 4, kind: input, shape index: {}]   ;;  %s4322_s5 = inlined_call_operand.hbm [shape: f32[32,32], index: 5, kind: input, shape index: {}]   ;;  %s4323_s6 = inlined_call_operand.hbm [shape: f32[2,32,32], index: 6, kind: input, shape index: {}]   ;;  %s4324_s7 = inlined_call_operand.vmem [shape: f32[1,32], index: 7, kind: input, shape index: {}]   ;;  %s4325_s8 = inlined_call_operand.hbm [shape: f32[16,512], index: 8, kind: input, shape index: {}]   ;;  %s4326_s9 = inlined_call_operand.hbm [shape: f32[32,512], index: 9, kind: input, shape index: {}]   ;;  %s4327_s10 = inlined_call_operand.hbm [shape: f32[32,512], index: 10, kind: input, shape index: {}]   ;;  %s4328_s11 = inlined_call_operand.vmem [shape: f32[1,512], index: 11, kind: input, shape index: {}]   ;;  %s4329_s12 = inlined_call_operand.hbm [shape: f32[32,512], index: 12, kind: input, shape index: {}]   ;;  %s4330_s13 = inlined_call_operand.hbm [shape: f32[32,512], index: 13, kind: input, shape index: {}]   ;;  %s4331_s14 = inlined_call_operand.vmem [shape: f32[1,512], index: 14, kind: input, shape index: {}]   ;;  %s4332_s15 = inlined_call_operand.vmem [shape: f32[32,16], index: 15, kind: input, shape index: {}]   ;;  %s4333_s16 = inlined_call_operand.vmem [shape: f32[1,16], index: 16, kind: input, shape index: {}]   ;;  %s4334_s17 = inlined_call_operand.hbm [shape: f32[8,768], index: 17, kind: output, shape index: {}]  }
   0x1   :  { %4338 = sst [smem:[#allocation27_spill]] %s4317_s0 }
   0x2   :  { %4339 = sst [smem:[#allocation28_spill]] %s4318_s1 }
   0x3   :  { %4340 = sst [smem:[#allocation29_spill]] %s4333_s16 }
   0x4   :  { %4341 = sst [smem:[#allocation30_spill]] %s4334_s17 }
   0x5   :  { %22 = vsyncpa [#allocation3], 0 }
   0x6   :  { %23 = vsyncpa [#allocation6], 0 }
   0x7   :  { %24 = vsyncpa [#allocation9], 0 }
   0x8   :  { %25 = vsyncpa [#allocation12], 0 }
   0x9   :  { %26 = vsyncpa [#allocation15], 0 }
   0xa   :  { %27 = vsyncpa [#allocation18], 0 }
   0xb   :  { %28 = vsyncpa [#allocation4], 0  ;;  %s3667_s24 = smov [#allocation5]   ;;  %s4342_s28 = sld [smem:[#allocation28_spill]] }
   0xc   :  { %s44_s25 = sshll.u32 %s3667_s24, 4  ;;  %s45_s25 = int_to_ptr.vmem [resolvable:$true] %s44_s25 }
  0x11   :  { %s3411_s29 = scalar_lea.hbm %s4342_s28, 256 }
  0x12   :  { %p3412_p0 = scmp.ne.s32.totalorder %s4342_s28, %s3411_s29  ;;  %p3415_p1 = scmp.lt.u32.totalorder %s3411_s29, %s4342_s28 }
  0x14   :  { %p3417_p2 = pnand %p3415_p1, %p3412_p0 }
  0x16   :  { %3420 = shalt.err (!%p3417_p2)
}
  0x17   :  { %s3421_s1 = scalar_lea.vmem %s45_s25, 256  ;;  %p3426_p4 = scmp.lt.s32.totalorder %s45_s25, %s45_s25 }
  0x18   :  { %p3422_p3 = scmp.ne.s32.totalorder %s45_s25, %s3421_s1  ;;  %p3427_p5 = scmp.lt.s32.totalorder %s3421_s1, %s3421_s1 }
  0x1a   :  { %p3428_p6 = por %p3427_p5, %p3426_p4 }
  0x1c   :  { %p3429_p7 = pnand %p3428_p6, %p3422_p3 }
  0x1e   :  { %3432 = shalt.err (!%p3429_p7)
}
  0x1f   :  { %s3668_s20 = smov 128   ;;  %s3669_s21 = smov 8  }
  0x20   :  { %50 = dma.hbm_to_vmem [thread:$0]  %s4342_s28, 256, %s45_s25, [#allocation6], %s3668_s20, %s3668_s20, %s3669_s21  }
  0x21   :  { %s3670_s24 = smov [#allocation8]   ;;  %s3671_s27 = smov [#allocation11]  }
  0x22   :  { %s72_s26 = sshll.u32 %s3670_s24, 4  ;;  %s98_s29 = sshll.u32 %s3671_s27, 4  ;;  %s73_s26 = int_to_ptr.vmem [resolvable:$true] %s72_s26  ;;  %s99_s29 = int_to_ptr.vmem [resolvable:$true] %s98_s29 }
  0x23   :  { %s3433_s18 = scalar_lea.hbm %s4322_s5, 512 }
  0x24   :  { %p3434_p8 = scmp.ne.s32.totalorder %s4322_s5, %s3433_s18  ;;  %p3437_p9 = scmp.lt.u32.totalorder %s3433_s18, %s4322_s5 }
  0x26   :  { %p3439_p10 = pnand %p3437_p9, %p3434_p8 }
  0x28   :  { %3442 = shalt.err (!%p3439_p10)
}
  0x29   :  { %s3443_s25 = scalar_lea.vmem %s73_s26, 512  ;;  %p3448_p12 = scmp.lt.s32.totalorder %s73_s26, %s73_s26 }
  0x2a   :  { %p3444_p11 = scmp.ne.s32.totalorder %s73_s26, %s3443_s25  ;;  %p3449_p13 = scmp.lt.s32.totalorder %s3443_s25, %s3443_s25 }
  0x2c   :  { %p3450_p0 = por %p3449_p13, %p3448_p12 }
  0x2e   :  { %p3451_p1 = pnand %p3450_p0, %p3444_p11 }
  0x30   :  { %3454 = shalt.err (!%p3451_p1)
}
  0x31   :  { %78 = dma.hbm_to_vmem [thread:$0]  %s4322_s5, 512, %s73_s26, [#allocation9], %s3668_s20, %s3668_s20, %s3669_s21  }
  0x32   :  { %s3455_s17 = scalar_lea.hbm %s4325_s8, 1024 }
  0x33   :  { %p3456_p2 = scmp.ne.s32.totalorder %s4325_s8, %s3455_s17  ;;  %p3459_p3 = scmp.lt.u32.totalorder %s3455_s17, %s4325_s8 }
  0x35   :  { %p3461_p4 = pnand %p3459_p3, %p3456_p2 }
  0x37   :  { %3464 = shalt.err (!%p3461_p4)
}
  0x38   :  { %s3465_s18 = scalar_lea.vmem %s99_s29, 1024  ;;  %p3470_p6 = scmp.lt.s32.totalorder %s99_s29, %s99_s29 }
  0x39   :  { %p3466_p5 = scmp.ne.s32.totalorder %s99_s29, %s3465_s18  ;;  %p3471_p7 = scmp.lt.s32.totalorder %s3465_s18, %s3465_s18 }
  0x3b   :  { %p3472_p8 = por %p3471_p7, %p3470_p6 }
  0x3d   :  { %p3473_p9 = pnand %p3472_p8, %p3466_p5 }
  0x3f   :  { %3476 = shalt.err (!%p3473_p9)
}
  0x40   :  { %s3672_s5 = smov 512   ;;  %s3673_s26 = smov 32  }
  0x41   :  { %104 = dma.hbm_to_vmem [thread:$0]  %s4325_s8, 1024, %s99_s29, [#allocation12], %s3672_s5, %s3672_s5, %s3673_s26  }
  0x42   :  { %s3674_s25 = smov [#allocation14]   ;;  %s3675_s22 = smov [#allocation2]  }
  0x43   :  { %s122_s28 = sshll.u32 %s3674_s25, 4  ;;  %s35_s23 = sshll.u32 %s3675_s22, 4  ;;  %s123_s28 = int_to_ptr.vmem [resolvable:$true] %s122_s28  ;;  %s36_s23 = int_to_ptr.vmem [resolvable:$true] %s35_s23 }
  0x44   :  { %s3477_s24 = scalar_lea.hbm %s4327_s10, 2048 }
  0x45   :  { %p3478_p10 = scmp.ne.s32.totalorder %s4327_s10, %s3477_s24  ;;  %p3481_p11 = scmp.lt.u32.totalorder %s3477_s24, %s4327_s10 }
  0x47   :  { %p3483_p12 = pnand %p3481_p11, %p3478_p10 }
  0x49   :  { %3486 = shalt.err (!%p3483_p12)
}
  0x4a   :  { %s3487_s8 = scalar_lea.vmem %s123_s28, 2048  ;;  %p3492_p0 = scmp.lt.s32.totalorder %s123_s28, %s123_s28 }
  0x4b   :  { %p3488_p13 = scmp.ne.s32.totalorder %s123_s28, %s3487_s8  ;;  %p3493_p1 = scmp.lt.s32.totalorder %s3487_s8, %s3487_s8 }
  0x4d   :  { %p3494_p2 = por %p3493_p1, %p3492_p0 }
  0x4f   :  { %p3495_p3 = pnand %p3494_p2, %p3488_p13 }
  0x51   :  { %3498 = shalt.err (!%p3495_p3)
}
  0x52   :  { %128 = dma.hbm_to_vmem [thread:$0]  %s4327_s10, 2048, %s123_s28, [#allocation15], %s3672_s5, %s3672_s5, %s3673_s26  }
  0x53   :  { %s4343_s22 = sld [smem:[#allocation27_spill]] }
  0x59   :  { %s3499_s16 = scalar_lea.hbm %s4343_s22, 128 }
  0x5a   :  { %p3500_p4 = scmp.ne.s32.totalorder %s4343_s22, %s3499_s16  ;;  %p3503_p5 = scmp.lt.u32.totalorder %s3499_s16, %s4343_s22 }
  0x5c   :  { %p3505_p6 = pnand %p3503_p5, %p3500_p4 }
  0x5e   :  { %3508 = shalt.err (!%p3505_p6)
}
  0x5f   :  { %s3509_s30 = scalar_lea.vmem %s36_s23, 128  ;;  %p3514_p8 = scmp.lt.s32.totalorder %s36_s23, %s36_s23 }
  0x60   :  { %p3510_p7 = scmp.ne.s32.totalorder %s36_s23, %s3509_s30  ;;  %p3515_p9 = scmp.lt.s32.totalorder %s3509_s30, %s3509_s30 }
  0x62   :  { %p3516_p10 = por %p3515_p9, %p3514_p8 }
  0x64   :  { %p3517_p11 = pnand %p3516_p10, %p3510_p7 }
  0x66   :  { %3520 = shalt.err (!%p3517_p11)
}
  0x67   :  { %38 = dma.hbm_to_vmem [thread:$0]  %s4343_s22, 128, %s36_s23, [#allocation3]  }
  0x68   :  { %s3676_s18 = smov [#allocation7]   ;;  %s3677_s29 = smov [#allocation10]  }
  0x69   :  { %s56_s8 = sshll.u32 %s3676_s18, 4  ;;  %s84_s19 = sshll.u32 %s3677_s29, 4  ;;  %s57_s8 = int_to_ptr.vmem [resolvable:$true] %s56_s8  ;;  %s85_s19 = int_to_ptr.vmem [resolvable:$true] %s84_s19 }
  0x6a   :  { %s3521_s16 = scalar_lea.hbm %s4319_s2, 256 }
  0x6b   :  { %p3522_p12 = scmp.ne.s32.totalorder %s4319_s2, %s3521_s16  ;;  %p3525_p13 = scmp.lt.u32.totalorder %s3521_s16, %s4319_s2 }
  0x6d   :  { %p3527_p0 = pnand %p3525_p13, %p3522_p12 }
  0x6f   :  { %3530 = shalt.err (!%p3527_p0)
}
  0x70   :  { %s3531_s23 = scalar_lea.vmem %s57_s8, 256  ;;  %p3536_p2 = scmp.lt.s32.totalorder %s57_s8, %s57_s8 }
  0x71   :  { %p3532_p1 = scmp.ne.s32.totalorder %s57_s8, %s3531_s23  ;;  %p3537_p3 = scmp.lt.s32.totalorder %s3531_s23, %s3531_s23 }
  0x73   :  { %p3538_p4 = por %p3537_p3, %p3536_p2 }
  0x75   :  { %p3539_p5 = pnand %p3538_p4, %p3532_p1 }
  0x77   :  { %3542 = shalt.err (!%p3539_p5)
}
  0x78   :  { %62 = dma.hbm_to_vmem [thread:$0]  %s4319_s2, 256, %s57_s8, [#allocation6], %s3668_s20, %s3668_s20, %s3669_s21  }
  0x79   :  { %s3543_s18 = scalar_lea.hbm %s4323_s6, 1024 }
  0x7a   :  { %p3544_p6 = scmp.ne.s32.totalorder %s4323_s6, %s3543_s18  ;;  %p3547_p7 = scmp.lt.u32.totalorder %s3543_s18, %s4323_s6 }
  0x7c   :  { %p3549_p8 = pnand %p3547_p7, %p3544_p6 }
  0x7e   :  { %3552 = shalt.err (!%p3549_p8)
}
  0x7f   :  { %s3553_s17 = scalar_lea.vmem %s85_s19, 1024  ;;  %p3558_p10 = scmp.lt.s32.totalorder %s85_s19, %s85_s19 }
  0x80   :  { %p3554_p9 = scmp.ne.s32.totalorder %s85_s19, %s3553_s17  ;;  %p3559_p11 = scmp.lt.s32.totalorder %s3553_s17, %s3553_s17 }
  0x82   :  { %p3560_p12 = por %p3559_p11, %p3558_p10 }
  0x84   :  { %p3561_p13 = pnand %p3560_p12, %p3554_p9 }
  0x86   :  { %3564 = shalt.err (!%p3561_p13)
}
  0x87   :  { %90 = dma.hbm_to_vmem [thread:$0]  %s4323_s6, 1024, %s85_s19, [#allocation9], %s3668_s20, %s3668_s20, %s3669_s21  }
  0x88   :  { %s3678_s24 = smov [#allocation13]   ;;  %s3679_s0 = smov [#allocation16]  }
  0x89   :  { %s110_s27 = sshll.u32 %s3678_s24, 4  ;;  %s136_s23 = sshll.u32 %s3679_s0, 4  ;;  %s111_s27 = int_to_ptr.vmem [resolvable:$true] %s110_s27  ;;  %s137_s23 = int_to_ptr.vmem [resolvable:$true] %s136_s23 }
  0x8a   :  { %s3565_s10 = scalar_lea.hbm %s4326_s9, 2048 }
  0x8b   :  { %p3566_p0 = scmp.ne.s32.totalorder %s4326_s9, %s3565_s10  ;;  %p3569_p1 = scmp.lt.u32.totalorder %s3565_s10, %s4326_s9 }
  0x8d   :  { %p3571_p2 = pnand %p3569_p1, %p3566_p0 }
  0x8f   :  { %3574 = shalt.err (!%p3571_p2)
}
  0x90   :  { %s3575_s6 = scalar_lea.vmem %s111_s27, 2048  ;;  %p3580_p4 = scmp.lt.s32.totalorder %s111_s27, %s111_s27 }
  0x91   :  { %p3576_p3 = scmp.ne.s32.totalorder %s111_s27, %s3575_s6  ;;  %p3581_p5 = scmp.lt.s32.totalorder %s3575_s6, %s3575_s6 }
  0x93   :  { %p3582_p6 = por %p3581_p5, %p3580_p4 }
  0x95   :  { %p3583_p7 = pnand %p3582_p6, %p3576_p3 }
  0x97   :  { %3586 = shalt.err (!%p3583_p7)
}
  0x98   :  { %116 = dma.hbm_to_vmem [thread:$0]  %s4326_s9, 2048, %s111_s27, [#allocation12], %s3672_s5, %s3672_s5, %s3673_s26  }
  0x99   :  { %s3587_s16 = scalar_lea.hbm %s4329_s12, 2048 }
  0x9a   :  { %p3588_p8 = scmp.ne.s32.totalorder %s4329_s12, %s3587_s16  ;;  %p3591_p9 = scmp.lt.u32.totalorder %s3587_s16, %s4329_s12 }
  0x9c   :  { %p3593_p10 = pnand %p3591_p9, %p3588_p8 }
  0x9e   :  { %3596 = shalt.err (!%p3593_p10)
}
  0x9f   :  { %s3597_s0 = scalar_lea.vmem %s137_s23, 2048  ;;  %p3602_p12 = scmp.lt.s32.totalorder %s137_s23, %s137_s23 }
  0xa0   :  { %p3598_p11 = scmp.ne.s32.totalorder %s137_s23, %s3597_s0  ;;  %p3603_p13 = scmp.lt.s32.totalorder %s3597_s0, %s3597_s0 }
  0xa2   :  { %p3604_p0 = por %p3603_p13, %p3602_p12 }
  0xa4   :  { %p3605_p1 = pnand %p3604_p0, %p3598_p11 }
  0xa6   :  { %3608 = shalt.err (!%p3605_p1)
}
  0xa7   :  { %142 = dma.hbm_to_vmem [thread:$0]  %s4329_s12, 2048, %s137_s23, [#allocation15], %s3672_s5, %s3672_s5, %s3673_s26  }
  0xa8   :  { %s3680_s22 = smov [#allocation17]   ;;  %s3609_s18 = scalar_lea.hbm %s4330_s13, 2048 }
  0xa9   :  { %s148_s30 = sshll.u32 %s3680_s22, 4  ;;  %p3610_p2 = scmp.ne.s32.totalorder %s4330_s13, %s3609_s18  ;;  %s149_s30 = int_to_ptr.vmem [resolvable:$true] %s148_s30 }
  0xaa   :  { %p3613_p3 = scmp.lt.u32.totalorder %s3609_s18, %s4330_s13 }
  0xac   :  { %p3615_p4 = pnand %p3613_p3, %p3610_p2 }
  0xae   :  { %3618 = shalt.err (!%p3615_p4)
}
  0xaf   :  { %s3619_s21 = scalar_lea.vmem %s149_s30, 2048  ;;  %p3624_p6 = scmp.lt.s32.totalorder %s149_s30, %s149_s30 }
  0xb0   :  { %p3620_p5 = scmp.ne.s32.totalorder %s149_s30, %s3619_s21  ;;  %p3625_p7 = scmp.lt.s32.totalorder %s3619_s21, %s3619_s21 }
  0xb2   :  { %p3626_p8 = por %p3625_p7, %p3624_p6 }
  0xb4   :  { %p3627_p9 = pnand %p3626_p8, %p3620_p5 }
  0xb6   :  { %3630 = shalt.err (!%p3627_p9)
}
  0xb7   :  { %154 = dma.hbm_to_vmem [thread:$0]  %s4330_s13, 2048, %s149_s30, [#allocation18], %s3672_s5, %s3672_s5, %s3673_s26  }
  0xb8   :  { %3653 = dma.done.wait [#allocation3], 128  }
  0xb9   :  { %3654 = vsyncadd [#allocation3], 4294967168 }
  0xba   :  { %3655 = dma.done.wait [#allocation6], 512  }
  0xbb   :  { %3656 = vsyncadd [#allocation6], 4294966784 }
  0xbc   :  { %3657 = dma.done.wait [#allocation9], 1536  }
  0xbd   :  { %3658 = vsyncadd [#allocation9], 4294965760 }
  0xbe   :  { %3659 = dma.done.wait [#allocation12], 3072  }
  0xbf   :  { %3660 = vsyncadd [#allocation12], 4294964224 }
  0xc0   :  { %3661 = dma.done.wait [#allocation15], 4096  }
  0xc1   :  { %3662 = vsyncadd [#allocation15], 4294963200 }
  0xc2   :  { %3663 = dma.done.wait [#allocation18], 2048  }
  0xc3   :  { %3664 = vsyncadd [#allocation18], 4294965248  ;;  %v206_v0 = vlaneseq  ;;  %v3681_v1 = vmov 0.0   ;;  %vm3682_vm0 = vmmov 0   ;;  %v3683_v2 = vmov 1966171168  }
  0xc4   :  { %3089 = vmatprep.subr.mxu0 %v3681_v1  ;;  %3094 = vmatprep.subr.mxu1 %v3681_v1  ;;  %v204_v3 = vunpack.c.l.s4 %v3683_v2  ;;  %v3684_v5 = vmov 0   ;;  %vm251_vm1 = vcmask 261120   ;;  %v3939_v8 = vld [vmem:[%s4320_s3] sm:$0xff]  ;;  %v3944_v9 = vld [vmem:[%s4320_s3 + $0x8] sm:$0xff]  ;;  %v3946_v10 = vld [vmem:[#allocation5 + $0x8] sm:$0xff]  ;;  %vm976_vm3 = vcmask 57344  }
  0xc5   :  { %3091 = vmatprep.mubr.msk.f32.mxu0 %vm3682_vm0, %v3681_v1  ;;  %v3929_v4 = vshrl.u32 %v206_v0, 7  ;;  %3096 = vmatprep.mubr.msk.f32.mxu1 %vm3682_vm0, %v3681_v1  ;;  %v202_v11 = vcombine.high %v3946_v10, %v3946_v10  ;;  %v3963_v15 = vld [vmem:[%s4320_s3 + $0x10] sm:$0xff]  ;;  %v854_v17 = vld [vmem:[%s4321_s4] sm:$0xff]  ;;  %v3973_v20 = vld [vmem:[%s4320_s3 + $0x18] sm:$0xff]  ;;  %v853_v49 = vand.u32 127, %v206_v0  ;;  %vm1097_vm11 = vcmask 64512  }
  0xc6   :  { %3341 = vset.pattern.permute.xlu0 %v3684_v5  ;;  %3342 = vset.pattern.permute.xlu1 %v3684_v5  ;;  %v205_v6 = vunpack.c.0.s8 %v204_v3  ;;  %v3984_v22 = vld [vmem:[%s4320_s3 + $0x20] sm:$0xff]  ;;  %v3996_v25 = vld [vmem:[%s4320_s3 + $0x28] sm:$0xff]  ;;  %v855_v27 = vcombine.high %v854_v17, %v854_v17  ;;  %v4008_v28 = vld [vmem:[%s4320_s3 + $0x30] sm:$0xff]  ;;  %vm1773_vm12 = vcmask 1041409   ;;  %vm1776_vm13 = vcmask 1042434   ;;  %s4360_s19 = sld [smem:[#allocation29_spill]] }
  0xc7   :  { %3090 = vmatpush3.xpose.msk.msra.mxu0 %vm251_vm1, %v3939_v8  ;;  %3095 = vmatpush3.xpose.msk.msra.mxu1 %vm251_vm1, %v3944_v9  ;;  %v4021_v32 = vld [vmem:[%s4320_s3 + $0x38] sm:$0xff]  ;;  %v4049_v46 = vsub.s32 0, %v3929_v4  ;;  %vm1779_vm14 = vcmask 1043459   ;;  %vm1782_vm15 = vcmask 1044484   ;;  %s3686_s25 = smov [#allocation19]  }
  0xc8   :  { %v3934_v7 = vsub.s32 %v205_v6, %v3929_v4  ;;  %3099 = vmatprep.subr.mxu0 %v3681_v1  ;;  %3104 = vmatprep.subr.mxu1 %v3681_v1  ;;  %s2969_s16 = sshll.u32 %s3686_s25, 4  ;;  %s2970_s16 = int_to_ptr.vmem [resolvable:$true] %s2969_s16 }
  0xc9   :  { %s3631_s17 = scalar_lea.vmem %s2970_s16, 768  ;;  %p3636_p11 = scmp.lt.s32.totalorder %s2970_s16, %s2970_s16 }
  0xca   :  { %v209_v12 = vrot.slane %v3946_v10, %v3934_v7  ;;  %v216_v13 = vrot.slane %v202_v11, %v3934_v7  ;;  %v862_v24 = vrot.slane %v854_v17, %v3934_v7  ;;  %v869_v37 = vrot.slane %v855_v27, %v3934_v7  ;;  %p3632_p10 = scmp.ne.s32.totalorder %s2970_s16, %s3631_s17  ;;  %p3637_p12 = scmp.lt.s32.totalorder %s3631_s17, %s3631_s17 }
  0xcc   :  { %v225_v14 = vrot.slane %v209_v12, %v3934_v7  ;;  %v217_v16 = vcombine.high %v209_v12, %v209_v12  ;;  %v218_v23 = vcombine.high %v216_v13, %v216_v13  ;;  %v232_v26 = vrot.slane %v216_v13, %v3934_v7  ;;  %p3638_p13 = por %p3637_p12, %p3636_p11 }
  0xcd   :  { %v878_v30 = vrot.slane %v862_v24, %v3934_v7  ;;  %v870_v31 = vcombine.high %v862_v24, %v862_v24  ;;  %v871_v39 = vcombine.high %v869_v37, %v869_v37  ;;  %v885_v40 = vrot.slane %v869_v37, %v3934_v7 }
  0xce   :  { %v247_v18 = vcombine.high %v225_v14, %v225_v14  ;;  %3092 = vmatmul.mubr.msk.f32.vlgmr.msra.gmra.mrb[0].mxu0 %vm251_vm1, %v225_v14  ;;  %v239_v19 = vrot.slane %v217_v16, %v3934_v7  ;;  %v246_v29 = vrot.slane %v218_v23, %v3934_v7  ;;  %v248_v33 = vcombine.high %v232_v26, %v232_v26  ;;  %p3639_p0 = pnand %p3638_p13, %p3632_p10 }
  0xcf   :  { %3100 = vmatpush3.xpose.msk.msra.mxu0 %vm251_vm1, %v3963_v15  ;;  %3101 = vmatprep.mubr.msk.f32.mxu0 %vm3682_vm0, %v3681_v1  ;;  %v900_v34 = vcombine.high %v878_v30, %v878_v30  ;;  %v892_v36 = vrot.slane %v870_v31, %v3934_v7  ;;  %v899_v41 = vrot.slane %v871_v39, %v3934_v7 }
  0xd0   :  { %v249_v21 = vcombine.high %v239_v19, %v239_v19  ;;  %3097 = vmatmul.mubr.msk.f32.vlgmr.msra.gmra.mrb[0].mxu1 %vm251_vm1, %v239_v19  ;;  %3109 = vmatprep.subr.mxu0 %v3681_v1  ;;  %v250_v35 = vcombine.high %v246_v29, %v246_v29  ;;  %v901_v42 = vcombine.high %v885_v40, %v885_v40 }
  0xd1   :  { %3105 = vmatpush3.xpose.msk.msra.mxu1 %vm251_vm1, %v3973_v20  ;;  %3106 = vmatprep.mubr.msk.f32.mxu1 %vm3682_vm0, %v3681_v1  ;;  %v902_v38 = vcombine.high %v892_v36, %v892_v36  ;;  %v903_v43 = vcombine.high %v899_v41, %v899_v41 }
  0xd2   :  { %3102 = vmatmul.mubr.msk.f32.vlgmr.msra.gmra.mrb[2].mxu0 %vm251_vm1, %v247_v18  ;;  %3114 = vmatprep.subr.mxu1 %v3681_v1 }
  0xd3   :  { %3110 = vmatpush3.xpose.msk.msra.mxu0 %vm251_vm1, %v3984_v22  ;;  %3111 = vmatprep.mubr.msk.f32.mxu0 %vm3682_vm0, %v3681_v1 }
  0xd4   :  { %3107 = vmatmul.mubr.msk.f32.vlgmr.msra.gmra.mrb[2].mxu1 %vm251_vm1, %v249_v21  ;;  %3119 = vmatprep.subr.mxu0 %v3681_v1 }
  0xd5   :  { %3115 = vmatpush3.xpose.msk.msra.mxu1 %vm251_vm1, %v3996_v25  ;;  %3116 = vmatprep.mubr.msk.f32.mxu1 %vm3682_vm0, %v3681_v1 }
  0xd6   :  { %3112 = vmatmul.mubr.msk.f32.vlgmr.msra.gmra.mrb[4].mxu0 %vm251_vm1, %v232_v26  ;;  %3124 = vmatprep.subr.mxu1 %v3681_v1 }
  0xd7   :  { %3120 = vmatpush3.xpose.msk.msra.mxu0 %vm251_vm1, %v4008_v28  ;;  %3121 = vmatprep.mubr.msk.f32.mxu0 %vm3682_vm0, %v3681_v1 }
  0xd8   :  { %3117 = vmatmul.mubr.msk.f32.vlgmr.msra.gmra.mrb[4].mxu1 %vm251_vm1, %v246_v29  ;;  %905 = vperm.xlu0 %3341, %v878_v30  }
  0xd9   :  { %3125 = vmatpush3.xpose.msk.msra.mxu1 %vm251_vm1, %v4021_v32  ;;  %3126 = vmatprep.mubr.msk.f32.mxu1 %vm3682_vm0, %v3681_v1 }
  0xda   :  { %3122 = vmatmul.mubr.msk.f32.vlgmr.msra.gmra.mrb[6].mxu0 %vm251_vm1, %v248_v33  ;;  %919 = vperm.xlu1 %3342, %v900_v34  }
  0xdb   :  { %3129 = vmatprep.subr.mxu0 %v3681_v1  ;;  %3131 = vmatprep.mubr.msk.f32.mxu0 %vm3682_vm0, %v3681_v1 }
  0xdc   :  { %3127 = vmatmul.mubr.msk.f32.vlgmr.msra.gmra.mrb[6].mxu1 %vm251_vm1, %v250_v35  ;;  %912 = vperm.xlu0 %3341, %v892_v36  }
  0xdd   :  { %3130 = vmatpush3.msra.mxu0 %v3939_v8  ;;  %3134 = vmatprep.subr.mxu1 %v3681_v1 }
  0xde   :  { %926 = vperm.xlu1 %3342, %v902_v38   ;;  %3135 = vmatpush3.msra.mxu1 %v3944_v9 }
  0xdf   :  { %3136 = vmatprep.mubr.msk.f32.mxu1 %vm3682_vm0, %v3681_v1  ;;  %3139 = vmatprep.subr.mxu0 %v3681_v1 }
  0xe0   :  { %933 = vperm.xlu0 %3341, %v885_v40   ;;  %3144 = vmatprep.subr.mxu1 %v3681_v1 }
  0xe2   :  { %940 = vperm.xlu1 %3342, %v899_v41  }
  0xe4   :  { %947 = vperm.xlu0 %3341, %v901_v42  }
  0xe6   :  { %954 = vperm.xlu1 %3342, %v903_v43  }
 0x157   :  { %v906_v44 = vpop.permute.xlu0 %905 }
 0x158   :  { %v910_v48 = vrot.slane %v906_v44, %v4049_v46 }
 0x159   :  { %v920_v45 = vpop.permute.xlu1 %919 }
 0x15a   :  { %v924_v51 = vrot.slane %v920_v45, %v4049_v46  ;;  %vm4055_vm2 = vcmp.lt.s32.totalorder %v853_v49, %v910_v48 }
 0x15b   :  { %v913_v47 = vpop.permute.xlu0 %912 }
 0x15c   :  { %v917_v52 = vrot.slane %v913_v47, %v4049_v46  ;;  %vm4067_vm5 = vcmp.lt.s32.totalorder %v853_v49, %v924_v51 }
 0x15d   :  { %v927_v50 = vpop.permute.xlu1 %926 }
 0x15e   :  { %v931_v59 = vrot.slane %v927_v50, %v4049_v46  ;;  %vm4062_vm4 = vcmp.lt.s32.totalorder %v853_v49, %v917_v52 }
 0x15f   :  { %v934_v54 = vpop.permute.xlu0 %933 }
 0x160   :  { %v938_v3 = vrot.slane %v934_v54, %v4049_v46  ;;  %vm4078_vm6 = vcmp.lt.s32.totalorder %v853_v49, %v931_v59 }
 0x161   :  { %v941_v56 = vpop.permute.xlu1 %940 }
 0x162   :  { %v945_v11 = vrot.slane %v941_v56, %v4049_v46  ;;  %vm4086_vm7 = vcmp.lt.s32.totalorder %v853_v49, %v938_v3 }
 0x163   :  { %v948_v7 = vpop.permute.xlu0 %947 }
 0x164   :  { %v952_v19 = vrot.slane %v948_v7, %v4049_v46  ;;  %vm4093_vm8 = vcmp.lt.s32.totalorder %v853_v49, %v945_v11 }
 0x165   :  { %v955_v16 = vpop.permute.xlu1 %954 }
 0x166   :  { %v959_v27 = vrot.slane %v955_v16, %v4049_v46  ;;  %vm4101_vm9 = vcmp.lt.s32.totalorder %v853_v49, %v952_v19 }
 0x167   :  { %v3005_v23 = vsel %vm4101_vm9, 1.0, %v3681_v1 }
 0x168   :  { %vm4107_vm10 = vcmp.lt.s32.totalorder %v853_v49, %v959_v27 }
 0x169   :  { %v3006_v30 = vsel %vm4107_vm10, 1.0, %v3681_v1 }
 0x1a1   :  { %v323_v55 = vpop.f32.mrb[0].mxu0 }
 0x1a2   :  { %v968_v57 = vsel %vm4055_vm2, %v323_v55, -1e+30  ;;  %v3093_v58 = vpop.f32.mrb[1].mxu0 }
 0x1a3   :  { %v398_v60 = vpop.f32.mrb[0].mxu1  ;;  %v977_v62 = vsel %vm976_vm3, %v968_v57, -inf }
 0x1a4   :  { %v969_v0 = vsel %vm4062_vm4, %v398_v60, -1e+30  ;;  %978 = vmax.xlane.f32.xlu0 %v977_v62  ;;  %v3098_v2 = vpop.f32.mrb[1].mxu1 }
 0x1a5   :  { %v473_v5 = vpop.f32.mrb[2].mxu0  ;;  %v980_v6 = vsel %vm976_vm3, %v969_v0, -inf }
 0x1a6   :  { %v970_v8 = vsel %vm4067_vm5, %v473_v5, -1e+30  ;;  %981 = vmax.xlane.f32.xlu1 %v980_v6  ;;  %v3103_v9 = vpop.f32.mrb[3].mxu0 }
 0x1a7   :  { %v548_v12 = vpop.f32.mrb[2].mxu1  ;;  %v983_v14 = vsel %vm976_vm3, %v970_v8, -inf }
 0x1a8   :  { %v971_v17 = vsel %vm4078_vm6, %v548_v12, -1e+30  ;;  %984 = vmax.xlane.f32.xlu0 %v983_v14  ;;  %v3108_v18 = vpop.f32.mrb[3].mxu1 }
 0x1a9   :  { %v623_v21 = vpop.f32.mrb[4].mxu0  ;;  %v986_v31 = vsel %vm976_vm3, %v971_v17, -inf  ;;  %v3000_v18 = vsel %vm4062_vm4, 1.0, %v3681_v1  ;;  %vm1791_vm4 = vcmask 1047559  }
 0x1aa   :  { %v972_v24 = vsel %vm4086_vm7, %v623_v21, -1e+30  ;;  %v3113_v26 = vpop.f32.mrb[5].mxu0 }
 0x1ab   :  { %v698_v29 = vpop.f32.mrb[4].mxu1  ;;  %v989_v33 = vsel %vm976_vm3, %v972_v24, -inf  ;;  %v3001_v26 = vsel %vm4067_vm5, 1.0, %v3681_v1  ;;  %vm2124_vm5 = vcmask 130048  }
 0x1ac   :  { %v973_v34 = vsel %vm4093_vm8, %v698_v29, -1e+30  ;;  %987 = vmax.xlane.f32.xlu0 %v986_v31  ;;  %990 = vmax.xlane.f32.xlu1 %v989_v33  ;;  %v3118_v35 = vpop.f32.mrb[5].mxu1 }
 0x1ad   :  { %v773_v36 = vpop.f32.mrb[6].mxu0  ;;  %v992_v42 = vsel %vm976_vm3, %v973_v34, -inf  ;;  %v3003_v35 = vsel %vm4086_vm7, 1.0, %v3681_v1 }
 0x1ae   :  { %v974_v38 = vsel %vm4101_vm9, %v773_v36, -1e+30  ;;  %v3123_v39 = vpop.f32.mrb[7].mxu0 }
 0x1af   :  { %v848_v40 = vpop.f32.mrb[6].mxu1  ;;  %v995_v43 = vsel %vm976_vm3, %v974_v38, -inf }
 0x1b0   :  { %v975_v44 = vsel %vm4107_vm10, %v848_v40, -1e+30  ;;  %993 = vmax.xlane.f32.xlu0 %v992_v42  ;;  %996 = vmax.xlane.f32.xlu1 %v995_v43  ;;  %v3128_v45 = vpop.f32.mrb[7].mxu1  ;;  %v3004_v42 = vsel %vm4093_vm8, 1.0, %v3681_v1 }
 0x1b1   :  { %v998_v47 = vsel %vm976_vm3, %v975_v44, -inf }
 0x1b4   :  { %999 = vmax.xlane.f32.xlu0 %v998_v47 }
 0x231   :  { %v979_v48 = vpop.xlane.xlu0 %978 }
 0x232   :  { %v1001_v50 = vsub.f32 %v968_v57, %v979_v48 }
 0x233   :  { %v982_v51 = vpop.xlane.xlu1 %981 }
 0x234   :  { %v1009_v49 = vmul.f32 1.442695, %v1001_v50  ;;  %v1002_v52 = vsub.f32 %v969_v0, %v982_v51 }
 0x235   :  { %v985_v54 = vpop.xlane.xlu0 %984 }
 0x236   :  { %3345 = vpow2.f32 %v1009_v49  ;;  %v1011_v55 = vmul.f32 1.442695, %v1002_v52  ;;  %v1003_v56 = vsub.f32 %v970_v8, %v985_v54  ;;  %v2999_v8 = vsel %vm4055_vm2, 1.0, %v3681_v1 }
 0x237   :  { %vm1785_vm2 = vcmask 1045509  }
 0x238   :  { %3347 = vpow2.f32 %v1011_v55  ;;  %v1013_v58 = vmul.f32 1.442695, %v1003_v56 }
 0x239   :  { %v988_v59 = vpop.xlane.xlu0 %987  ;;  %v991_v60 = vpop.xlane.xlu1 %990 }
 0x23a   :  { %3349 = vpow2.f32 %v1013_v58  ;;  %v1004_v62 = vsub.f32 %v971_v17, %v988_v59  ;;  %v1005_v2 = vsub.f32 %v972_v24, %v991_v60 }
 0x23c   :  { %v1015_v3 = vmul.f32 1.442695, %v1004_v62  ;;  %v1017_v5 = vmul.f32 1.442695, %v1005_v2 }
 0x23d   :  { %v994_v6 = vpop.xlane.xlu0 %993  ;;  %v997_v7 = vpop.xlane.xlu1 %996 }
 0x23e   :  { %3351 = vpow2.f32 %v1015_v3  ;;  %v1006_v57 = vsub.f32 %v973_v34, %v994_v6  ;;  %v1007_v9 = vsub.f32 %v974_v38, %v997_v7  ;;  %v3002_v34 = vsel %vm4078_vm6, 1.0, %v3681_v1 }
 0x23f   :  { %3353 = vpow2.f32 %v1017_v5 }
 0x240   :  { %v3346_v0 = vpop.eup %3345  ;;  %v1019_v11 = vmul.f32 1.442695, %v1006_v57  ;;  %v1021_v12 = vmul.f32 1.442695, %v1007_v9 }
 0x241   :  { %v1000_v14 = vpop.xlane.xlu0 %999  ;;  %v4119_v16 = vmul.f32 %v3346_v0, %v2999_v8 }
 0x242   :  { %v3348_v17 = vpop.eup %3347  ;;  %3355 = vpow2.f32 %v1019_v11  ;;  %v1008_v19 = vsub.f32 %v975_v44, %v1000_v14 }
 0x243   :  { %3357 = vpow2.f32 %v1021_v12  ;;  %v1049_v21 = vsel %vm976_vm3, %v4119_v16, 0.0  ;;  %v4126_v24 = vmul.f32 %v3348_v17, %v3000_v18 }
 0x244   :  { %v3350_v53 = vpop.eup %3349  ;;  %v1023_v27 = vmul.f32 1.442695, %v1008_v19  ;;  %1050 = vadd.xlane.f32.xlu1 %v1049_v21 }
 0x245   :  { %v1052_v29 = vsel %vm976_vm3, %v4126_v24, 0.0  ;;  %v4133_v61 = vmul.f32 %v3350_v53, %v3001_v26 }
 0x246   :  { %3359 = vpow2.f32 %v1023_v27  ;;  %1053 = vadd.xlane.f32.xlu0 %v1052_v29 }
 0x247   :  { %v1055_v31 = vsel %vm976_vm3, %v4133_v61, 0.0 }
 0x248   :  { %v3352_v33 = vpop.eup %3351  ;;  %1056 = vadd.xlane.f32.xlu1 %v1055_v31 }
 0x249   :  { %v3354_v63 = vpop.eup %3353  ;;  %v4143_v36 = vmul.f32 %v3352_v33, %v3002_v34 }
 0x24a   :  { %v4145_v38 = vmul.f32 %v3354_v63, %v3003_v35 }
 0x24b   :  { %v1058_v39 = vsel %vm976_vm3, %v4143_v36, 0.0 }
 0x24c   :  { %v3356_v40 = vpop.eup %3355  ;;  %1059 = vadd.xlane.f32.xlu0 %v1058_v39  ;;  %v1061_v13 = vsel %vm976_vm3, %v4145_v38, 0.0  ;;  %v1687_v39 = vld [vmem:[#allocation10] sm:$0xff] }
 0x24d   :  { %v3358_v43 = vpop.eup %3357  ;;  %1062 = vadd.xlane.f32.xlu1 %v1061_v13  ;;  %v4157_v44 = vmul.f32 %v3356_v40, %v3004_v42  ;;  %v1688_v40 = vld [vmem:[#allocation10 + $0x8] sm:$0xff]  ;;  %v3685_v13 = vmov 0.0|0.0  }
 0x24e   :  { %v4159_v45 = vmul.f32 %v3358_v43, %v3005_v23  ;;  %v3214_v42 = vpack.c.bf16 %v1688_v40, %v1687_v39  ;;  %v1689_v43 = vld [vmem:[#allocation10 + $0x10] sm:$0xff]  ;;  %v1690_v23 = vld [vmem:[#allocation10 + $0x18] sm:$0xff] }
 0x24f   :  { %v1064_v47 = vsel %vm976_vm3, %v4157_v44, 0.0 }
 0x250   :  { %v3360_v48 = vpop.eup %3359  ;;  %1065 = vadd.xlane.f32.xlu0 %v1064_v47  ;;  %v1067_v50 = vsel %vm976_vm3, %v4159_v45, 0.0  ;;  %v1683_v47 = vld [vmem:[#allocation8 + $0x8] sm:$0xff] }
 0x251   :  { %1068 = vadd.xlane.f32.xlu1 %v1067_v50  ;;  %v4168_v37 = vmul.f32 %v3360_v48, %v3006_v30  ;;  %v1867_v30 = vld [vmem:[#allocation10 + $0x20] sm:$0xff]  ;;  %v1868_v50 = vld [vmem:[#allocation10 + $0x28] sm:$0xff] }
 0x253   :  { %v1070_v51 = vsel %vm976_vm3, %v4168_v37, 0.0  ;;  %vm1788_vm3 = vcmask 1046534  }
 0x254   :  { %1071 = vadd.xlane.f32.xlu0 %v1070_v51  ;;  %v4226_v51 = vld [vmem:[#allocation5] sm:$0xff] }
 0x2d1   :  { %v1051_v49 = vpop.xlane.xlu1 %1050 }
 0x2d2   :  { %v1073_v52 = vmax.f32 %v1051_v49, 1e-20  ;;  %v1684_v49 = vld [vmem:[#allocation8 + $0x10] sm:$0xff] }
 0x2d3   :  { %v1054_v54 = vpop.xlane.xlu0 %1053 }
 0x2d4   :  { %3361 = vrcp.f32 %v1073_v52  ;;  %v1074_v55 = vmax.f32 %v1054_v54, 1e-20  ;;  %v1685_v52 = vld [vmem:[#allocation8 + $0x18] sm:$0xff] }
 0x2d5   :  { %v1057_v56 = vpop.xlane.xlu1 %1056  ;;  %v3223_v54 = vpack.c.bf16 %v1685_v52, %v1684_v49  ;;  %v1978_v49 = vld [vmem:[#allocation13 + $0x78] sm:$0xff]  ;;  %v1973_v52 = vld [vmem:[#allocation13 + $0x50] sm:$0xff] }
 0x2d6   :  { %3363 = vrcp.f32 %v1074_v55  ;;  %v1075_v41 = vmax.f32 %v1057_v56, 1e-20  ;;  %v1869_v55 = vld [vmem:[#allocation10 + $0x30] sm:$0xff]  ;;  %v1870_v56 = vld [vmem:[#allocation10 + $0x38] sm:$0xff] }
 0x2d8   :  { %3365 = vrcp.f32 %v1075_v41  ;;  %v3229_v41 = vpack.c.bf16 %v1870_v56, %v1869_v55  ;;  %v1977_v55 = vld [vmem:[#allocation13 + $0x70] sm:$0xff]  ;;  %v1956_v56 = vld [vmem:[#allocation11 + $0x8] sm:$0xff] }
 0x2d9   :  { %v1060_v58 = vpop.xlane.xlu0 %1059 }
 0x2da   :  { %v1076_v59 = vmax.f32 %v1060_v58, 1e-20  ;;  %v1063_v60 = vpop.xlane.xlu1 %1062 }
 0x2db   :  { %v1077_v62 = vmax.f32 %v1063_v60, 1e-20 }
 0x2dc   :  { %3367 = vrcp.f32 %v1076_v59 }
 0x2dd   :  { %3369 = vrcp.f32 %v1077_v62  ;;  %v1066_v2 = vpop.xlane.xlu0 %1065 }
 0x2de   :  { %v3362_v3 = vpop.eup %3361  ;;  %v1078_v5 = vmax.f32 %v1066_v2, 1e-20  ;;  %v1069_v6 = vpop.xlane.xlu1 %1068 }
 0x2df   :  { %v1079_v7 = vmax.f32 %v1069_v6, 1e-20  ;;  %v1082_v57 = vmul.f32 %v3362_v3, %v4119_v16 }
 0x2e0   :  { %v3364_v9 = vpop.eup %3363  ;;  %3371 = vrcp.f32 %v1078_v5 }
 0x2e1   :  { %3373 = vrcp.f32 %v1079_v7  ;;  %v1072_v0 = vpop.xlane.xlu0 %1071  ;;  %3132 = vmatmul.mubr.msk.f32.vlgmr.msra.gmra.mrb[8].mxu0 %vm1097_vm11, %v1082_v57  ;;  %v1084_v8 = vmul.f32 %v3364_v9, %v4126_v24 }
 0x2e2   :  { %v3366_v11 = vpop.eup %3365  ;;  %v1080_v12 = vmax.f32 %v1072_v0, 1e-20  ;;  %3140 = vmatpush3.msra.mxu0 %v3963_v15  ;;  %3141 = vmatprep.mubr.msk.f32.mxu0 %vm3682_vm0, %v3681_v1 }
 0x2e3   :  { %3137 = vmatmul.mubr.msk.f32.vlgmr.msra.gmra.mrb[8].mxu1 %vm1097_vm11, %v1084_v8  ;;  %v1086_v14 = vmul.f32 %v3366_v11, %v4133_v61  ;;  %3149 = vmatprep.subr.mxu0 %v3681_v1  ;;  %v2947_v16 = vrot.slane %v1084_v8, 7 }
 0x2e4   :  { %3375 = vrcp.f32 %v1080_v12  ;;  %3145 = vmatpush3.msra.mxu1 %v3973_v20  ;;  %3146 = vmatprep.mubr.msk.f32.mxu1 %vm3682_vm0, %v3681_v1 }
 0x2e5   :  { %3142 = vmatmul.mubr.msk.f32.vlgmr.msra.gmra.mrb[10].mxu0 %vm1097_vm11, %v1086_v14  ;;  %3154 = vmatprep.subr.mxu1 %v3681_v1  ;;  %v2949_v17 = vrot.slane %v1086_v14, 6  ;;  %v2948_v20 = vsel %vm1773_vm12, %v2947_v16, %v1082_v57 }
 0x2e6   :  { %v3368_v15 = vpop.eup %3367  ;;  %3150 = vmatpush3.msra.mxu0 %v3984_v22  ;;  %3151 = vmatprep.mubr.msk.f32.mxu0 %vm3682_vm0, %v3681_v1 }
 0x2e7   :  { %v3370_v18 = vpop.eup %3369  ;;  %v1088_v19 = vmul.f32 %v3368_v15, %v4143_v36  ;;  %3159 = vmatprep.subr.mxu0 %v3681_v1  ;;  %v2950_v22 = vsel %vm1776_vm13, %v2949_v17, %v2948_v20 }
 0x2e8   :  { %v1090_v21 = vmul.f32 %v3370_v18, %v4145_v38 }
 0x2e9   :  { %3147 = vmatmul.mubr.msk.f32.vlgmr.msra.gmra.mrb[10].mxu1 %vm1097_vm11, %v1088_v19  ;;  %v2951_v24 = vrot.slane %v1088_v19, 5 }
 0x2ea   :  { %v3372_v53 = vpop.eup %3371  ;;  %3152 = vmatmul.mubr.msk.f32.vlgmr.msra.gmra.mrb[12].mxu0 %vm1097_vm11, %v1090_v21  ;;  %3155 = vmatpush3.msra.mxu1 %v3996_v25  ;;  %v2953_v26 = vrot.slane %v1090_v21, 4 }
 0x2eb   :  { %v3374_v27 = vpop.eup %3373  ;;  %3156 = vmatprep.mubr.msk.f32.mxu1 %vm3682_vm0, %v3681_v1  ;;  %3160 = vmatpush3.msra.mxu0 %v4008_v28  ;;  %v1092_v29 = vmul.f32 %v3372_v53, %v4157_v44  ;;  %v2952_v61 = vsel %vm1779_vm14, %v2951_v24, %v2950_v22  ;;  %v3217_v44 = vpack.c.bf16 %v1690_v23, %v1689_v43  ;;  %v1969_v43 = vld [vmem:[#allocation13 + $0x30] sm:$0xff]  ;;  %v1972_v23 = vld [vmem:[#allocation13 + $0x48] sm:$0xff] }
 0x2ec   :  { %v1094_v31 = vmul.f32 %v3374_v27, %v4159_v45  ;;  %3161 = vmatprep.mubr.msk.f32.mxu0 %vm3682_vm0, %v3681_v1  ;;  %3164 = vmatprep.subr.mxu1 %v3681_v1  ;;  %v2954_v28 = vsel %vm1782_vm15, %v2953_v26, %v2952_v61  ;;  %v1682_v45 = vld [vmem:[#allocation8] sm:$0xff] }
 0x2ed   :  { %3157 = vmatmul.mubr.msk.f32.vlgmr.msra.gmra.mrb[12].mxu1 %vm1097_vm11, %v1092_v29  ;;  %v2955_v25 = vrot.slane %v1092_v29, 3  ;;  %3213 = vmatprep.subr.bf16.mxu0 %v3685_v13  ;;  %v3220_v48 = vpack.c.bf16 %v1683_v47, %v1682_v45  ;;  %v1976_v45 = vld [vmem:[#allocation13 + $0x68] sm:$0xff]  ;;  %v1971_v47 = vld [vmem:[#allocation13 + $0x40] sm:$0xff] }
 0x2ee   :  { %v3376_v33 = vpop.eup %3375  ;;  %v2957_v34 = vrot.slane %v1094_v31, 2  ;;  %3162 = vmatmul.mubr.msk.f32.vlgmr.msra.gmra.mrb[14].mxu0 %vm1097_vm11, %v1094_v31  ;;  %3165 = vmatpush3.msra.mxu1 %v4021_v32 }
 0x2ef   :  { %v1096_v63 = vmul.f32 %v3376_v33, %v4168_v37  ;;  %3166 = vmatprep.mubr.msk.f32.mxu1 %vm3682_vm0, %v3681_v1  ;;  %v2956_v35 = vsel %vm1785_vm2, %v2955_v25, %v2954_v28  ;;  %3177 = vmatprep.mubr.msk.f32.mxu0 %vm3682_vm0, %v3681_v1  ;;  %v3226_v37 = vpack.c.bf16 %v1868_v50, %v1867_v30  ;;  %v1968_v28 = vld [vmem:[#allocation13 + $0x28] sm:$0xff] }
 0x2f0   :  { %v2958_v38 = vsel %vm1788_vm3, %v2957_v34, %v2956_v35  ;;  %3219 = vmatprep.subr.bf16.mxu1 %v3685_v13  ;;  %3215 = vmatpush3.bf16.msra.mxu0 %v3214_v42  ;;  %v1964_v34 = vld [vmem:[#allocation13 + $0x8] sm:$0xff]  ;;  %v1965_v42 = vld [vmem:[#allocation13 + $0x10] sm:$0xff]  ;;  %v3235_v30 = vpack.c.bf16 %v1976_v45, %v1972_v23  ;;  %v2506_v45 = vld [vmem:[#allocation17 + $0x20] sm:$0xff] }
 0x2f1   :  { %v2959_v36 = vrot.slane %v1096_v63, 1  ;;  %3167 = vmatmul.mubr.msk.f32.vlgmr.msra.gmra.mrb[14].mxu1 %vm1097_vm11, %v1096_v63  ;;  %3216 = vmatprep.subr.bf16.mxu0 %v3685_v13  ;;  %v1963_v63 = vld [vmem:[#allocation13] sm:$0xff]  ;;  %v3231_v35 = vpack.c.bf16 %v1968_v28, %v1964_v34 }
 0x2f2   :  { %3188 = vmatprep.mubr.msk.f32.mxu1 %vm3682_vm0, %v3681_v1  ;;  %3221 = vmatpush3.bf16.msra.mxu1 %v3220_v48  ;;  %v1975_v48 = vld [vmem:[#allocation13 + $0x60] sm:$0xff] }
 0x2f3   :  { %v2960_v32 = vsel %vm1791_vm4, %v2959_v36, %v2958_v38  ;;  %3222 = vmatprep.subr.bf16.mxu1 %v3685_v13  ;;  %v1967_v36 = vld [vmem:[#allocation13 + $0x20] sm:$0xff]  ;;  %v1966_v38 = vld [vmem:[#allocation13 + $0x18] sm:$0xff]  ;;  %v3237_v50 = vpack.c.bf16 %v1975_v48, %v1971_v47 }
 0x2f4   :  { %2962 = vst.msk [vmem:[#allocation19 + $0x28] sm:$0xff] %vm1097_vm11, %v2960_v32  ;;  %3218 = vmatpush3.bf16.msra.mxu0 %v3217_v44  ;;  %v1970_v32 = vld [vmem:[#allocation13 + $0x38] sm:$0xff]  ;;  %v3233_v39 = vpack.c.bf16 %v1967_v36, %v1963_v63  ;;  %v3241_v44 = vpack.c.bf16 %v1969_v43, %v1965_v42  ;;  %v2278_v28 = vld [vmem:[#allocation14 + $0x40] sm:$0xff]  ;;  %v2503_v42 = vld [vmem:[#allocation17 + $0x8] sm:$0xff] }
 0x2f5   :  { %3225 = vmatprep.subr.bf16.mxu0 %v3685_v13  ;;  %v3239_v40 = vpack.c.bf16 %v1970_v32, %v1966_v38  ;;  %v2280_v38 = vld [vmem:[#allocation14 + $0x50] sm:$0xff]  ;;  %v2507_v43 = vld [vmem:[#allocation17 + $0x28] sm:$0xff]  ;;  %v2505_v47 = vld [vmem:[#allocation17 + $0x18] sm:$0xff] }
 0x2f6   :  { %3224 = vmatpush3.bf16.msra.mxu1 %v3223_v54  ;;  %v2284_v32 = vld [vmem:[#allocation14 + $0x70] sm:$0xff]  ;;  %v3271_v23 = vpack.c.bf16 %v2507_v43, %v2503_v42 }
 0x2f7   :  { %3178 = vmatmul.mubr.msk.f32.vlgmr.msra.gmra.mrb[16].mxu0 %vm251_vm1, %v4226_v51  ;;  %3232 = vmatprep.subr.bf16.mxu1 %v3231_v35  ;;  %v2282_v35 = vld [vmem:[#allocation14 + $0x60] sm:$0xff] }
 0x2f8   :  { %3227 = vmatpush3.bf16.msra.mxu0 %v3226_v37  ;;  %3199 = vmatprep.mubr.msk.f32.mxu0 %vm3682_vm0, %v3681_v1  ;;  %v1974_v37 = vld [vmem:[#allocation13 + $0x58] sm:$0xff] }
 0x2f9   :  { %3228 = vmatprep.subr.bf16.mxu0 %v3685_v13  ;;  %v3243_v54 = vpack.c.bf16 %v1978_v49, %v1974_v37  ;;  %v2508_v37 = vld [vmem:[#allocation17 + $0x30] sm:$0xff] }
 0x2fc   :  { %3230 = vmatpush3.bf16.msra.mxu0 %v3229_v41  ;;  %v1960_v41 = vld [vmem:[#allocation11 + $0x28] sm:$0xff] }
 0x2fd   :  { %3240 = vmatprep.subr.bf16.mxu0 %v3239_v40  ;;  %v3269_v40 = vpack.c.bf16 %v2284_v32, %v2280_v38 }
 0x2ff   :  { %3200 = vmatmul.mubr.msk.f32.vlgmr.msra.gmra.mrb[18].mxu0 %vm251_vm1, %v3946_v10 }
 0x300   :  { %2117 = vmatprep.mubr.f32.mxu0 %v3681_v1  ;;  %3242 = vmatpush1.bf16.msra.mxu0 %v3241_v44  ;;  %v2502_v44 = vld [vmem:[#allocation17] sm:$0xff] }
 0x301   :  { %3244 = vmatprep.subr.bf16.mxu0 %v3243_v54  ;;  %v3273_v48 = vpack.c.bf16 %v2506_v45, %v2502_v44  ;;  %v2511_v54 = vld [vmem:[#allocation17 + $0x48] sm:$0xff]  ;;  %v2444_v44 = vsub.s32 2, %v3929_v4 }
 0x3b4   :  { %v1167_v58 = vpop.f32.mrb[8].mxu0 }
 0x3b5   :  { %v3133_v59 = vpop.f32.mrb[9].mxu0 }
 0x3b6   :  { %v1240_v60 = vpop.f32.mrb[8].mxu1  ;;  %v3247_v59 = vpack.c.bf16 %v1960_v41, %v1956_v56  ;;  %v2510_v41 = vld [vmem:[#allocation17 + $0x40] sm:$0xff] }
 0x3b7   :  { %v1772_v62 = vrot.slane %v1240_v60, 7  ;;  %v3138_v2 = vpop.f32.mrb[9].mxu1  ;;  %v1958_v60 = vld [vmem:[#allocation11 + $0x18] sm:$0xff] }
 0x3b8   :  { %v1313_v3 = vpop.f32.mrb[10].mxu0 }
 0x3b9   :  { %v1774_v5 = vsel %vm1773_vm12, %v1772_v62, %v1167_v58  ;;  %v1775_v6 = vrot.slane %v1313_v3, 6  ;;  %v3143_v7 = vpop.f32.mrb[11].mxu0  ;;  %v3245_v58 = vpack.c.bf16 %v1977_v55, %v1973_v52  ;;  %v1962_v62 = vld [vmem:[#allocation11 + $0x38] sm:$0xff] }
 0x3ba   :  { %v3251_v2 = vpack.c.bf16 %v1962_v62, %v1958_v60  ;;  %v3018_v7 = vld [vmem:[%s4324_s7] ss:$0 sm:$0xff] }
 0x3bb   :  { %v1777_v57 = vsel %vm1776_vm13, %v1775_v6, %v1774_v5  ;;  %3246 = vmatpush1.bf16.msra.mxu0 %v3245_v58  ;;  %v2513_v55 = vld [vmem:[#allocation17 + $0x58] sm:$0xff]  ;;  %v2514_v58 = vld [vmem:[#allocation17 + $0x60] sm:$0xff] }
 0x3bc   :  { %v1386_v9 = vpop.f32.mrb[10].mxu1  ;;  %3252 = vmatprep.subr.bf16.mxu0 %v3251_v2  ;;  %v3277_v60 = vpack.c.bf16 %v2514_v58, %v2510_v41  ;;  %v2512_v2 = vld [vmem:[#allocation17 + $0x50] sm:$0xff] }
 0x3bd   :  { %v1778_v0 = vrot.slane %v1386_v9, 5  ;;  %v1459_v8 = vpop.f32.mrb[12].mxu0  ;;  %v3148_v11 = vpop.f32.mrb[11].mxu1 }
 0x3be   :  { %v1781_v12 = vrot.slane %v1459_v8, 4  ;;  %v3153_v10 = vpop.f32.mrb[13].mxu0  ;;  %v1959_v8 = vld [vmem:[#allocation11 + $0x20] sm:$0xff]  ;;  %v1957_v11 = vld [vmem:[#allocation11 + $0x10] sm:$0xff] }
 0x3bf   :  { %v1780_v14 = vsel %vm1779_vm14, %v1778_v0, %v1777_v57  ;;  %v1955_v0 = vld [vmem:[#allocation11] sm:$0xff]  ;;  %v2271_v10 = vld [vmem:[#allocation14 + $0x8] sm:$0xff] }
 0x3c0   :  { %v1783_v16 = vsel %vm1782_vm15, %v1781_v12, %v1780_v14  ;;  %v1532_v15 = vpop.f32.mrb[12].mxu1  ;;  %v1961_v12 = vld [vmem:[#allocation11 + $0x30] sm:$0xff]  ;;  %v2275_v14 = vld [vmem:[#allocation14 + $0x28] sm:$0xff] }
 0x3c1   :  { %v1784_v17 = vrot.slane %v1532_v15, 3  ;;  %v1605_v18 = vpop.f32.mrb[14].mxu0  ;;  %v3158_v19 = vpop.f32.mrb[13].mxu1  ;;  %v2277_v15 = vld [vmem:[#allocation14 + $0x38] sm:$0xff] }
 0x3c2   :  { %v1787_v20 = vrot.slane %v1605_v18, 2  ;;  %v3163_v21 = vpop.f32.mrb[15].mxu0  ;;  %v3253_v18 = vpack.c.bf16 %v1961_v12, %v1957_v11  ;;  %v2488_v11 = vld [vmem:[#allocation16 + $0x18] sm:$0xff] }
 0x3c3   :  { %v1786_v24 = vsel %vm1785_vm2, %v1784_v17, %v1783_v16  ;;  %v2273_v16 = vld [vmem:[#allocation14 + $0x18] sm:$0xff]  ;;  %v3249_v17 = vpack.c.bf16 %v1959_v8, %v1955_v0  ;;  %v2489_v8 = vld [vmem:[#allocation16 + $0x20] sm:$0xff] }
 0x3c4   :  { %v1789_v53 = vsel %vm1788_vm3, %v1787_v20, %v1786_v24  ;;  %v1678_v22 = vpop.f32.mrb[14].mxu1  ;;  %v3255_v20 = vpack.c.bf16 %v2275_v14, %v2271_v10  ;;  %v3263_v21 = vpack.c.bf16 %v2277_v15, %v2273_v16  ;;  %v2270_v24 = vld [vmem:[#allocation14] sm:$0xff]  ;;  %v2492_v12 = vld [vmem:[#allocation16 + $0x38] sm:$0xff]  ;;  %v2487_v16 = vld [vmem:[#allocation16 + $0x10] sm:$0xff] }
 0x3c5   :  { %v1790_v26 = vrot.slane %v1678_v22, 1  ;;  %v3168_v27 = vpop.f32.mrb[15].mxu1  ;;  %v2272_v22 = vld [vmem:[#allocation14 + $0x10] sm:$0xff]  ;;  %v3295_v14 = vpack.c.bf16 %v2492_v12, %v2488_v11 }
 0x3c6   :  { %v2279_v27 = vld [vmem:[#allocation14 + $0x48] sm:$0xff]  ;;  %v2491_v15 = vld [vmem:[#allocation16 + $0x30] sm:$0xff] }
 0x3c7   :  { %v1792_v29 = vsel %vm1791_vm4, %v1790_v26, %v1789_v53  ;;  %v2274_v53 = vld [vmem:[#allocation14 + $0x20] sm:$0xff]  ;;  %v2276_v26 = vld [vmem:[#allocation14 + $0x30] sm:$0xff] }
 0x3c8   :  { %3189 = vmatmul.mubr.msk.f32.vlgmr.msra.gmra.mrb[16].mxu1 %vm251_vm1, %v1792_v29  ;;  %v2283_v29 = vld [vmem:[#allocation14 + $0x68] sm:$0xff]  ;;  %v3265_v34 = vpack.c.bf16 %v2276_v26, %v2272_v22  ;;  %v2500_v22 = vld [vmem:[#allocation16 + $0x78] sm:$0xff]  ;;  %v2495_v26 = vld [vmem:[#allocation16 + $0x50] sm:$0xff] }
 0x3c9   :  { %2046 = vmatprep.mubr.f32.mxu1 %v3681_v1  ;;  %3234 = vmatpush1.bf16.msra.mxu1 %v3233_v39  ;;  %v3259_v63 = vpack.c.bf16 %v2283_v29, %v2279_v27  ;;  %v3261_v39 = vpack.c.bf16 %v2282_v35, %v2278_v28 }
 0x3ca   :  { %v1760_v61 = vpop.f32.mrb[16].mxu0  ;;  %3236 = vmatprep.subr.bf16.mxu1 %v3235_v30  ;;  %v2509_v30 = vld [vmem:[#allocation17 + $0x38] sm:$0xff] }
 0x3cb   :  { %v3179_v31 = vpop.f32.mrb[17].mxu0  ;;  %v3279_v49 = vpack.c.bf16 %v2509_v30, %v2505_v47 }
 0x3cc   :  { %v2285_v31 = vld [vmem:[#allocation14 + $0x78] sm:$0xff] }
 0x3cd   :  { %3238 = vmatpush1.bf16.msra.mxu1 %v3237_v50  ;;  %v2504_v50 = vld [vmem:[#allocation17 + $0x10] sm:$0xff] }
 0x3ce   :  { %3248 = vmatprep.subr.bf16.mxu1 %v3247_v59  ;;  %v3281_v52 = vpack.c.bf16 %v2508_v37, %v2504_v50  ;;  %v2517_v59 = vld [vmem:[#allocation17 + $0x78] sm:$0xff] }
 0x3cf   :  { %v3283_v62 = vpack.c.bf16 %v2517_v59, %v2513_v55  ;;  %v2477_v55 = vld [vmem:[#allocation7] sm:$0xff] }
 0x3d2   :  { %v1940_v25 = vpop.f32.mrb[18].mxu0 }
 0x3d3   :  { %v3201_v33 = vpop.f32.mrb[19].mxu0 }
 0x3d4   :  { %v3257_v33 = vpack.c.bf16 %v2274_v53, %v2270_v24  ;;  %v2496_v53 = vld [vmem:[#allocation16 + $0x58] sm:$0xff] }
 0x3d5   :  { %v3299_v29 = vpack.c.bf16 %v2500_v22, %v2496_v53 }
 0x49b   :  { %v1861_v3 = vpop.f32.mrb[16].mxu1 }
 0x49c   :  { %v1862_v5 = vadd.f32 %v1861_v3, %v1760_v61  ;;  %v3190_v6 = vpop.f32.mrb[17].mxu1  ;;  %v2281_v61 = vld [vmem:[#allocation14 + $0x58] sm:$0xff]  ;;  %v2516_v3 = vld [vmem:[#allocation17 + $0x70] sm:$0xff] }
 0x49d   :  { %v3267_v36 = vpack.c.bf16 %v2285_v31, %v2281_v61  ;;  %v3285_v6 = vpack.c.bf16 %v2516_v3, %v2512_v2  ;;  %v2499_v61 = vld [vmem:[#allocation16 + $0x70] sm:$0xff] }
 0x49e   :  { %v1944_v57 = vadd.f32 %v1940_v25, %v1862_v5  ;;  %v1954_v25 = vld [vmem:[#allocation2] sm:$0xff]  ;;  %v2486_v5 = vld [vmem:[#allocation16 + $0x8] sm:$0xff]  ;;  %v3301_v31 = vpack.c.bf16 %v2499_v61, %v2495_v26 }
 0x4a0   :  { %v1952_v9 = vadd.f32 %v3018_v7, %v1944_v57  ;;  %v2490_v7 = vld [vmem:[#allocation16 + $0x28] sm:$0xff] }
 0x4a1   :  { %v2501_v57 = vld [vmem:[#allocation5 + $0x8] sm:$0xff]  ;;  %v3287_v0 = vpack.c.bf16 %v2490_v7, %v2486_v5  ;;  %v2862_v5 = vld [vmem:[%s4332_s15] sm:$0xff] }
 0x4a2   :  { %3377 = vtanh.f32 %v1952_v9  ;;  %v2485_v9 = vld [vmem:[#allocation16] sm:$0xff]  ;;  %v2864_v7 = vld [vmem:[%s4332_s15 + $0x10] sm:$0xff] }
 0x4a3   :  { %v3289_v10 = vpack.c.bf16 %v2489_v8, %v2485_v9  ;;  %v2865_v9 = vld [vmem:[%s4332_s15 + $0x18] sm:$0xff] }
 0x4ac   :  { %v3378_v19 = vpop.eup %3377 }
 0x4ad   :  { %3019 = vmatmul.mubr.msk.f32.vlgmr.msra.gmra.mrb[18].mxu1 %vm251_vm1, %v3378_v19  ;;  %3020 = vmatmul.mubr.msk.f32.vlgmr.msra.gmra.mrb[20].mxu0 %vm251_vm1, %v3378_v19  ;;  %v2498_v19 = vld [vmem:[#allocation16 + $0x68] sm:$0xff] }
 0x4ae   :  { %3250 = vmatpush1.bf16.msra.mxu1 %v3249_v17  ;;  %3254 = vmatpush1.bf16.msra.mxu0 %v3253_v18  ;;  %v2494_v17 = vld [vmem:[#allocation16 + $0x48] sm:$0xff]  ;;  %v3297_v18 = vpack.c.bf16 %v2491_v15, %v2487_v16 }
 0x4af   :  { %2192 = vmatprep.mubr.f32.mxu1 %v3681_v1  ;;  %2263 = vmatprep.mubr.f32.mxu0 %v3681_v1  ;;  %v3291_v24 = vpack.c.bf16 %v2498_v19, %v2494_v17 }
 0x4b0   :  { %3256 = vmatprep.subr.bf16.mxu1 %v3255_v20  ;;  %3264 = vmatprep.subr.bf16.mxu0 %v3263_v21  ;;  %v2493_v20 = vld [vmem:[#allocation16 + $0x40] sm:$0xff] }
 0x4b1   :  { %v2497_v21 = vld [vmem:[#allocation16 + $0x60] sm:$0xff] }
 0x4b2   :  { %v3293_v27 = vpack.c.bf16 %v2497_v21, %v2493_v20 }
 0x4b5   :  { %3021 = vmatmul.mubr.msk.f32.vlgmr.msra.gmra.mrb[18].mxu1 %vm2124_vm5, %v1954_v25  ;;  %3022 = vmatmul.mubr.msk.f32.vlgmr.msra.gmra.mrb[20].mxu0 %vm2124_vm5, %v1954_v25  ;;  %v2432_v25 = vld [vmem:[%s4328_s11] sm:$0xf] }
 0x4b6   :  { %3258 = vmatpush1.bf16.msra.mxu1 %v3257_v33  ;;  %3266 = vmatpush1.bf16.msra.mxu0 %v3265_v34  ;;  %v2440_v33 = vsub.s32 1, %v3929_v4  ;;  %v2437_v34 = vrot.slane %v2432_v25, %v4049_v46  ;;  %v2445_v47 = vrot.slane %v2432_v25, %v2444_v44 }
 0x4b7   :  { %3260 = vmatprep.subr.bf16.mxu1 %v3259_v63  ;;  %3268 = vmatprep.subr.bf16.mxu0 %v3267_v36  ;;  %v2448_v36 = vsub.s32 3, %v3929_v4 }
 0x4b8   :  { %2350 = vmatprep.mubr.f32.mxu1 %v3681_v1  ;;  %2421 = vmatprep.mubr.f32.mxu0 %v3681_v1  ;;  %v2441_v28 = vrot.slane %v2432_v25, %v2440_v33 }
 0x4ba   :  { %3262 = vmatpush1.bf16.msra.mxu1 %v3261_v39  ;;  %3270 = vmatpush1.bf16.msra.mxu0 %v3269_v40 }
 0x4bb   :  { %3272 = vmatprep.subr.bf16.mxu1 %v3271_v23  ;;  %3280 = vmatprep.subr.bf16.mxu0 %v3279_v49  ;;  %v2449_v23 = vrot.slane %v2432_v25, %v2448_v36 }
 0x4bd   :  { %3023 = vmatmul.mubr.msk.f32.vlgmr.msra.gmra.mrb[18].mxu1 %vm251_vm1, %v4226_v51  ;;  %3024 = vmatmul.mubr.msk.f32.vlgmr.msra.gmra.mrb[20].mxu0 %vm251_vm1, %v4226_v51  ;;  %v2515_v51 = vld [vmem:[#allocation17 + $0x68] sm:$0xff] }
 0x4be   :  { %2585 = vmatprep.mubr.f32.mxu1 %v3681_v1  ;;  %2656 = vmatprep.mubr.f32.mxu0 %v3681_v1  ;;  %v3275_v56 = vpack.c.bf16 %v2515_v51, %v2511_v54 }
 0x4bf   :  { %3274 = vmatpush1.bf16.msra.mxu1 %v3273_v48  ;;  %3282 = vmatpush1.bf16.msra.mxu0 %v3281_v52 }
 0x4c0   :  { %3276 = vmatprep.subr.bf16.mxu1 %v3275_v56  ;;  %3284 = vmatprep.subr.bf16.mxu0 %v3283_v62 }
 0x4c3   :  { %3278 = vmatpush1.bf16.msra.mxu1 %v3277_v60  ;;  %3286 = vmatpush1.bf16.msra.mxu0 %v3285_v6  ;;  %v2863_v6 = vld [vmem:[%s4332_s15 + $0x8] sm:$0xff] }
 0x4c4   :  { %3288 = vmatprep.subr.bf16.mxu1 %v3287_v0  ;;  %3296 = vmatprep.subr.bf16.mxu0 %v3295_v14  ;;  %v3307_v0 = vpack.c.bf16 %v2865_v9, %v2864_v7 }
 0x4c6   :  { %3028 = vmatmul.mubr.msk.f32.vlgmr.msra.gmra.mrb[20].mxu1 %vm251_vm1, %v2501_v57  ;;  %3029 = vmatmul.mubr.msk.f32.vlgmr.msra.gmra.mrb[22].mxu0 %vm251_vm1, %v2501_v57  ;;  %v3304_v57 = vpack.c.bf16 %v2863_v6, %v2862_v5 }
 0x4c7   :  { %3290 = vmatpush1.bf16.msra.mxu1 %v3289_v10  ;;  %2730 = vmatprep.mubr.f32.mxu1 %v3681_v1 }
 0x4c8   :  { %3292 = vmatprep.subr.bf16.mxu1 %v3291_v24  ;;  %3298 = vmatpush1.bf16.msra.mxu0 %v3297_v18 }
 0x4c9   :  { %2801 = vmatprep.mubr.f32.mxu0 %v3681_v1  ;;  %3300 = vmatprep.subr.bf16.mxu0 %v3299_v29 }
 0x4cb   :  { %3294 = vmatpush1.bf16.msra.mxu1 %v3293_v27 }
 0x4cc   :  { %3303 = vmatprep.subr.bf16.mxu1 %v3685_v13  ;;  %3302 = vmatpush1.bf16.msra.mxu0 %v3301_v31  ;;  %v2854_v31 = vld [vmem:[#allocation7 + $0x8] sm:$0xff] }
 0x590   :  { %v2352_v63 = vpop.f32.mrb[18].mxu1  ;;  %v2423_v35 = vpop.f32.mrb[20].mxu0 }
 0x591   :  { %v2454_v38 = vadd.f32 %v2437_v34, %v2352_v63  ;;  %v2354_v32 = vpop.f32.mrb[19].mxu1  ;;  %v2425_v39 = vpop.f32.mrb[21].mxu0  ;;  %v2456_v30 = vadd.f32 %v2445_v47, %v2423_v35 }
 0x592   :  { %v2455_v40 = vadd.f32 %v2441_v28, %v2354_v32  ;;  %v2457_v45 = vadd.f32 %v2449_v23, %v2425_v39  ;;  %v3035_v39 = vld [vmem:[%s4360_s19] ss:$0 sm:$0xff] }
 0x593   :  { %v3025_v42 = vmul.f32 -1.442695, %v2454_v38 }
 0x594   :  { %v3026_v43 = vmul.f32 -1.442695, %v2455_v40  ;;  %v3027_v48 = vmul.f32 -1.442695, %v2457_v45 }
 0x595   :  { %3379 = vpow2.f32 %v3025_v42 }
 0x596   :  { %3381 = vpow2.f32 %v3026_v43 }
 0x597   :  { %3383 = vpow2.f32 %v3027_v48 }
 0x598   :  { %3385 = vtanh.f32 %v2456_v30 }
 0x59f   :  { %v3380_v50 = vpop.eup %3379 }
 0x5a0   :  { %v3382_v37 = vpop.eup %3381  ;;  %v2461_v49 = vadd.f32 1.0, %v3380_v50 }
 0x5a1   :  { %v2467_v52 = vadd.f32 1.0, %v3382_v37  ;;  %v3384_v54 = vpop.eup %3383 }
 0x5a2   :  { %3387 = vrcp.f32 %v2461_v49  ;;  %v3386_v51 = vpop.eup %3385  ;;  %v2474_v4 = vadd.f32 1.0, %v3384_v54 }
 0x5a3   :  { %3389 = vrcp.f32 %v2467_v52 }
 0x5a4   :  { %3391 = vrcp.f32 %v2474_v4 }
 0x5ac   :  { %v3388_v56 = vpop.eup %3387 }
 0x5ad   :  { %v3390_v41 = vpop.eup %3389  ;;  %v2479_v58 = vmul.f32 %v3388_v56, %v3386_v51 }
 0x5ae   :  { %v2478_v59 = vmul.f32 %v3390_v41, %v2477_v55  ;;  %v3392_v62 = vpop.eup %3391 }
 0x5b0   :  { %v2480_v60 = vadd.f32 %v2479_v58, %v2478_v59 }
 0x5b2   :  { %3393 = vtanh.f32 %v2480_v60  ;;  %2484 = vst.msk [vmem:[#allocation19 + $0x18] sm:$0xff] %vm251_vm1, %v2480_v60 }
 0x5bc   :  { %v3394_v2 = vpop.eup %3393 }
 0x5bd   :  { %v2482_v3 = vmul.f32 %v3394_v2, %v3392_v62 }
 0x5bf   :  { %3030 = vmatmul.mubr.msk.f32.vlgmr.msra.gmra.mrb[20].mxu1 %vm251_vm1, %v2482_v3  ;;  %2483 = vst.msk [vmem:[#allocation19 + $0x8] sm:$0xff] %vm251_vm1, %v2482_v3  ;;  %3031 = vmatmul.mubr.msk.f32.vlgmr.msra.gmra.mrb[22].mxu0 %vm251_vm1, %v2482_v3 }
 0x5c0   :  { %3210 = vmatprep.mubr.msk.f32.mxu1 %vm3682_vm0, %v3681_v1  ;;  %3305 = vmatpush3.bf16.msra.mxu1 %v3304_v57  ;;  %v2808_v1 = vld [vmem:[%s4331_s14] sm:$0xf] }
 0x5c1   :  { %3306 = vmatprep.subr.bf16.mxu1 %v3685_v13  ;;  %v2813_v8 = vrot.slane %v2808_v1, %v4049_v46  ;;  %v2817_v11 = vrot.slane %v2808_v1, %v2440_v33  ;;  %v2825_v20 = vrot.slane %v2808_v1, %v2448_v36  ;;  %v2821_v21 = vrot.slane %v2808_v1, %v2444_v44 }
 0x5c4   :  { %3308 = vmatpush3.bf16.msra.mxu1 %v3307_v0 }
 0x692   :  { %v2732_v12 = vpop.f32.mrb[20].mxu1  ;;  %v2803_v10 = vpop.f32.mrb[22].mxu0 }
 0x693   :  { %v2830_v14 = vadd.f32 %v2813_v8, %v2732_v12  ;;  %v2734_v16 = vpop.f32.mrb[21].mxu1  ;;  %v2805_v15 = vpop.f32.mrb[23].mxu0  ;;  %v2832_v53 = vadd.f32 %v2821_v21, %v2803_v10 }
 0x694   :  { %v2831_v17 = vadd.f32 %v2817_v11, %v2734_v16  ;;  %v2833_v13 = vadd.f32 %v2825_v20, %v2805_v15 }
 0x695   :  { %v3032_v18 = vmul.f32 -1.442695, %v2830_v14 }
 0x696   :  { %v3033_v19 = vmul.f32 -1.442695, %v2831_v17  ;;  %v3034_v24 = vmul.f32 -1.442695, %v2833_v13 }
 0x697   :  { %3395 = vpow2.f32 %v3032_v18 }
 0x698   :  { %3397 = vpow2.f32 %v3033_v19 }
 0x699   :  { %3399 = vpow2.f32 %v3034_v24 }
 0x69a   :  { %3401 = vtanh.f32 %v2832_v53 }
 0x6a1   :  { %v3396_v22 = vpop.eup %3395 }
 0x6a2   :  { %v3398_v26 = vpop.eup %3397  ;;  %v2837_v27 = vadd.f32 1.0, %v3396_v22 }
 0x6a3   :  { %v2843_v46 = vadd.f32 1.0, %v3398_v26  ;;  %v3400_v29 = vpop.eup %3399 }
 0x6a4   :  { %3403 = vrcp.f32 %v2837_v27  ;;  %v3402_v61 = vpop.eup %3401  ;;  %v2850_v28 = vadd.f32 1.0, %v3400_v29 }
 0x6a5   :  { %3405 = vrcp.f32 %v2843_v46 }
 0x6a6   :  { %3407 = vrcp.f32 %v2850_v28 }
 0x6ae   :  { %v3404_v25 = vpop.eup %3403 }
 0x6af   :  { %v3406_v33 = vpop.eup %3405  ;;  %v2856_v34 = vmul.f32 %v3404_v25, %v3402_v61 }
 0x6b0   :  { %v2855_v63 = vmul.f32 %v3406_v33, %v2854_v31  ;;  %v3408_v36 = vpop.eup %3407 }
 0x6b2   :  { %v2857_v35 = vadd.f32 %v2856_v34, %v2855_v63 }
 0x6b4   :  { %3409 = vtanh.f32 %v2857_v35  ;;  %2861 = vst.msk [vmem:[#allocation19 + $0x20] sm:$0xff] %vm251_vm1, %v2857_v35 }
 0x6be   :  { %v3410_v38 = vpop.eup %3409 }
 0x6bf   :  { %v2859_v32 = vmul.f32 %v3410_v38, %v3408_v36 }
 0x6c1   :  { %3211 = vmatmul.mubr.msk.f32.vlgmr.msra.gmra.mrb[22].mxu1 %vm251_vm1, %v2859_v32  ;;  %2860 = vst.msk [vmem:[#allocation19 + $0x10] sm:$0xff] %vm251_vm1, %v2859_v32 }
 0x794   :  { %v2942_v40 = vpop.f32.mrb[22].mxu1 }
 0x795   :  { %v2943_v42 = vadd.f32 %v3035_v39, %v2942_v40  ;;  %v3212_v43 = vpop.f32.mrb[23].mxu1 }
 0x797   :  { %2946 = vst.msk [vmem:[#allocation19] sm:$0xff] %vm2124_vm5, %v2943_v42 }
 0x798   :  { %3642 = shalt.err (!%p3639_p0)
}
 0x799   :  { %s4361_s24 = sld [smem:[#allocation30_spill]] }
 0x79f   :  { %s3643_s4 = scalar_lea.hbm %s4361_s24, 768 }
 0x7a0   :  { %p3644_p1 = scmp.ne.s32.totalorder %s4361_s24, %s3643_s4  ;;  %p3647_p2 = scmp.lt.u32.totalorder %s3643_s4, %s4361_s24 }
 0x7a2   :  { %p3649_p3 = pnand %p3647_p2, %p3644_p1 }
 0x7a4   :  { %3652 = shalt.err (!%p3649_p3)
}
 0x7a5   :  { %2972 = dma.vmem_to_hbm [thread:$0]  %s2970_s16, 768, %s4361_s24, [#allocation4]  }
 0x7a6   :  { %3665 = dma.done.wait [#allocation4], 768  }
 0x7a7   :  { %3666 = vsyncadd [#allocation4], 4294966528 }
 0x7a8   :  { %2976 = vsyncpa [#allocation3], 1 }
 0x7a9   :  { %2977 = vsyncpa [#allocation6], 1 }
 0x7aa   :  { %2978 = vsyncpa [#allocation9], 1 }
 0x7ab   :  { %2979 = vsyncpa [#allocation12], 1 }
 0x7ac   :  { %2980 = vsyncpa [#allocation15], 1 }
 0x7ad   :  { %2981 = vsyncpa [#allocation18], 1 }
 0x7ae   :  { %2982 = vsyncpa [#allocation4], 1 }

</bundles_post_ra>
